<compile_context>
chip_gen: v7x
topology: tpu7x:2x2x1
jax: 0.10.0
libtpu: 0.0.40
codegen_flags: <defaults>
</compile_context>

<pallas_src>
import functools

import jax
import jax.numpy as jnp
from jax import lax
from jax.experimental import pallas as pl
from jax.experimental.pallas import tpu as pltpu


# ----------------------------------------------------------------------------
# Pallas kernel: depthwise 3x3 + BN + ReLU + pointwise 1x1 + BN + ReLU
# ----------------------------------------------------------------------------
def dws_kernel(x_ref, wdw_ref, b1_ref, wpw_ref, b2_ref, o_ref,
               *, stride, TH, Wo):
    # x_ref : (1, s, Hs, s, Ws, C)  bf16 space-to-depth padded NHWC (1 image)
    # wdw   : (3, 3, C)   f32  depthwise weights with BN1 scale folded in
    # b1    : (1, C)      f32  BN1 folded bias
    # wpw   : (C, Cout_p) bf16 pointwise weights with BN2 scale folded in
    # b2    : (1, Cout_p) f32  BN2 folded bias (zero in padded lanes)
    # o_ref : (1, TH, Wo, Cout_p) bf16 output row-tile
    C = x_ref.shape[-1]
    r = pl.program_id(1)
    row0 = pl.multiple_of(r * TH, TH)

    wdw = wdw_ref[...]                       # (3, 3, C), tiny

    # Depthwise 3x3: 9 unrolled taps, each a unit-stride ref slice thanks to
    # the space-to-depth layout.  Accumulate in f32.
    acc = jnp.zeros((TH, Wo, C), jnp.float32)
    for kh in range(3):
        qh, ph = divmod(kh, stride)
        for kw in range(3):
            qw, pw = divmod(kw, stride)
            patch = x_ref[0, ph, pl.ds(row0 + qh, TH), pw, pl.ds(qw, Wo), :]
            acc = acc + patch.astype(jnp.float32) * wdw[kh, kw, :]

    # BN1 (scale already folded into wdw) + ReLU, then bf16 for the MXU.
    h = jnp.maximum(acc + b1_ref[0], 0.0).astype(jnp.bfloat16)

    # Pointwise 1x1 conv == matmul over channels (bf16 MXU path, f32 accum).
    # NOTE: for layers with tiny C this underfills the 256-wide MXU; a VPU
    # FMA loop would be an alternative there, but the dot stays correct.
    y = jnp.dot(h.reshape(TH * Wo, C), wpw_ref[...],
                preferred_element_type=jnp.float32)

    # BN2 (scale folded into wpw) + ReLU, lane-dense store.
    y = jnp.maximum(y + b2_ref[0], 0.0)
    o_ref[...] = y.astype(o_ref.dtype).reshape(1, TH, Wo, -1)


# ----------------------------------------------------------------------------
# Wrapper: BN folding, layout plumbing, pallas_call
# ----------------------------------------------------------------------------
def depthwise_separable_conv(x_nchw, w_dw_t, g1, b1, m1, v1,
                             w_pw_t, g2, b2, m2, v2, *, stride, eps=1e-5):
    assert stride in (1, 2)
    N, C, H, W = x_nchw.shape
    Cout = w_pw_t.shape[0]
    Ho = (H + 2 - 3) // stride + 1
    Wo = (W + 2 - 3) // stride + 1

    # ---- fold BN into the conv weights / per-channel biases -----------------
    scale1 = g1 / jnp.sqrt(v1 + eps)
    bias1 = (b1 - m1 * scale1).reshape(1, C).astype(jnp.float32)
    scale2 = g2 / jnp.sqrt(v2 + eps)
    bias2 = b2 - m2 * scale2

    wdw = (jnp.transpose(w_dw_t[:, 0], (1, 2, 0)) * scale1).astype(jnp.float32)
    wpw = jnp.transpose(w_pw_t[:, :, 0, 0], (1, 0)) * scale2[None, :]  # (C, Cout)

    # lane-dense output: pad Cout up to a multiple of 128
    Cout_p = ((Cout + 127) // 128) * 128
    wpw = jnp.pad(wpw, ((0, 0), (0, Cout_p - Cout))).astype(jnp.bfloat16)
    bias2p = jnp.pad(bias2, (0, Cout_p - Cout)).reshape(1, Cout_p)
    bias2p = bias2p.astype(jnp.float32)

    # ---- activations: NCHW -> NHWC bf16, pad=1, space-to-depth -------------
    s = stride
    x = jnp.transpose(x_nchw, (0, 2, 3, 1)).astype(jnp.bfloat16)
    xp = jnp.pad(x, ((0, 0), (1, 1), (1, 1), (0, 0)))
    Hp, Wp = H + 2, W + 2
    Hs = -(-Hp // s)
    Ws = -(-Wp // s)
    xp = jnp.pad(xp, ((0, 0), (0, Hs * s - Hp), (0, Ws * s - Wp), (0, 0)))
    # xs[n, ph, i, pw, j, c] == xp[n, i*s + ph, j*s + pw, c]
    # (for stride=1 this is just a free reshape, no data movement)
    xs = xp.reshape(N, Hs, s, Ws, s, C).transpose(0, 2, 1, 4, 3, 5)

    # ---- row tiling ----------------------------------------------------------
    TH = 1
    for t in (32, 16, 8, 4, 2, 1):
        if Ho % t == 0:
            TH = t
            break
    R = Ho // TH

    kernel = functools.partial(dws_kernel, stride=stride, TH=TH, Wo=Wo)

    out_nhwc = pl.pallas_call(
        kernel,
        out_shape=jax.ShapeDtypeStruct((N, Ho, Wo, Cout_p), jnp.bfloat16),
        grid=(N, R),
        in_specs=[
            # whole-image s2d block; index constant in r => fetched once/image
            pl.BlockSpec((1, s, Hs, s, Ws, C), lambda n, r: (n, 0, 0, 0, 0, 0)),
            pl.BlockSpec((3, 3, C), lambda n, r: (0, 0, 0)),
            pl.BlockSpec((1, C), lambda n, r: (0, 0)),
            pl.BlockSpec((C, Cout_p), lambda n, r: (0, 0)),
            pl.BlockSpec((1, Cout_p), lambda n, r: (0, 0)),
        ],
        out_specs=pl.BlockSpec((1, TH, Wo, Cout_p), lambda n, r: (n, r, 0, 0)),
        compiler_params=pltpu.CompilerParams(
            dimension_semantics=("parallel", "parallel"),
            vmem_limit_bytes=32 * 1024 * 1024),
    )(xs, wdw, bias1, wpw, bias2p)

    out_nhwc = out_nhwc[..., :Cout]
    return jnp.transpose(out_nhwc, (0, 3, 1, 2))   # NCHW, bf16


# ----------------------------------------------------------------------------
# Pure-JAX f32 reference (NCHW, same semantics) for verification
# ----------------------------------------------------------------------------
def reference(x, w_dw_t, g1, b1, m1, v1, w_pw_t, g2, b2, m2, v2, *, stride,
              eps=1e-5):
    C = x.shape[1]
    y = lax.conv_general_dilated(
        x, w_dw_t, (stride, stride), ((1, 1), (1, 1)),
        feature_group_count=C,
        dimension_numbers=("NCHW", "OIHW", "NCHW"))
    y = (y - m1[None, :, None, None]) / jnp.sqrt(v1 + eps)[None, :, None, None]
    y = y * g1[None, :, None, None] + b1[None, :, None, None]
    y = jnp.maximum(y, 0.0)
    y = lax.conv_general_dilated(
        y, w_pw_t, (1, 1), ((0, 0), (0, 0)),
        dimension_numbers=("NCHW", "OIHW", "NCHW"))
    y = (y - m2[None, :, None, None]) / jnp.sqrt(v2 + eps)[None, :, None, None]
    y = y * g2[None, :, None, None] + b2[None, :, None, None]
    return jnp.maximum(y, 0.0)


if __name__ == "__main__":
    eps = 1e-5
    N, C, H, W = 2, 4, 16, 16
    Cout = 8

    key = jax.random.PRNGKey(0)
    keys = jax.random.split(key, 11)

    x = jax.random.normal(keys[0], (N, C, H, W), jnp.float32)

    # PyTorch-layout parameters (deterministic synthetic init)
    w_dw_t = 0.3 * jax.random.normal(keys[1], (C, 1, 3, 3), jnp.float32)
    g1 = 1.0 + 0.1 * jax.random.normal(keys[2], (C,), jnp.float32)
    b1 = 0.1 * jax.random.normal(keys[3], (C,), jnp.float32)
    m1 = 0.1 * jax.random.normal(keys[4], (C,), jnp.float32)
    v1 = jax.random.uniform(keys[5], (C,), jnp.float32, 0.5, 1.5)

    w_pw_t = 0.3 * jax.random.normal(keys[6], (Cout, C, 1, 1), jnp.float32)
    g2 = 1.0 + 0.1 * jax.random.normal(keys[7], (Cout,), jnp.float32)
    b2 = 0.1 * jax.random.normal(keys[8], (Cout,), jnp.float32)
    m2 = 0.1 * jax.random.normal(keys[9], (Cout,), jnp.float32)
    v2 = jax.random.uniform(keys[10], (Cout,), jnp.float32, 0.5, 1.5)

    for stride in (1, 2):
        out = depthwise_separable_conv(
            x, w_dw_t, g1, b1, m1, v1, w_pw_t, g2, b2, m2, v2,
            stride=stride, eps=eps)
        out = jax.block_until_ready(out).astype(jnp.float32)
        ref = reference(x, w_dw_t, g1, b1, m1, v1, w_pw_t, g2, b2, m2, v2,
                        stride=stride, eps=eps)
        assert out.shape == ref.shape, (out.shape, ref.shape)
        # bf16 activations/weights in the kernel -> loosened tolerance
        assert jnp.allclose(out, ref, atol=3e-2, rtol=3e-2), (
            f"mismatch at stride={stride}: "
            f"max abs diff {float(jnp.max(jnp.abs(out - ref)))}")

    print("KERNEL_OK")
</pallas_src>

<mosaic_0001>
module attributes {stable_mosaic.version = 11 : i64} {
  func.func @dws_kernel(%arg0: i32, %arg1: i32, %arg2: memref<1x1x18x1x18x4xbf16, #tpu.memory_space<vmem>>, %arg3: memref<3x3x4xf32, #tpu.memory_space<vmem>>, %arg4: memref<1x4xf32, #tpu.memory_space<vmem>>, %arg5: memref<4x128xbf16, #tpu.memory_space<vmem>>, %arg6: memref<1x128xf32, #tpu.memory_space<vmem>>, %arg7: memref<1x16x16x128xbf16, #tpu.memory_space<vmem>>) attributes {dimension_semantics = [#tpu.dimension_semantics<parallel>, #tpu.dimension_semantics<parallel>], iteration_bounds = array<i64: 2, 1>, scalar_prefetch = 0 : i64, scratch_operands = 0 : i64, tpu.core_type = #tpu.core_type<tc>, window_params = [{transform_indices = @transform_0, window_bounds = array<i64: 1, 1, 18, 1, 18, 4>}, {pipeline_mode = #tpu.pipeline_mode<synchronous>, transform_indices = @transform_1, window_bounds = array<i64: 3, 3, 4>}, {pipeline_mode = #tpu.pipeline_mode<synchronous>, transform_indices = @transform_2, window_bounds = array<i64: 1, 4>}, {pipeline_mode = #tpu.pipeline_mode<synchronous>, transform_indices = @transform_3, window_bounds = array<i64: 4, 128>}, {pipeline_mode = #tpu.pipeline_mode<synchronous>, transform_indices = @transform_4, window_bounds = array<i64: 1, 128>}, {transform_indices = @transform_5, window_bounds = array<i64: 1, 16, 16, 128>}]} {
    %c16_i32 = arith.constant 16 : i32
    %0 = arith.muli %arg1, %c16_i32 : i32
    %1 = tpu.assume_multiple %0, 16 : i32
    %c0 = arith.constant 0 : index
    %c0_0 = arith.constant 0 : index
    %c0_1 = arith.constant 0 : index
    %2 = vector.load %arg3[%c0, %c0_0, %c0_1] : memref<3x3x4xf32, #tpu.memory_space<vmem>>, vector<3x3x4xf32>
    %cst = arith.constant 0.000000e+00 : f32
    %3 = vector.broadcast %cst : f32 to vector<16x16x4xf32>
    %c0_i32 = arith.constant 0 : i32
    %4 = arith.addi %1, %c0_i32 : i32
    %c0_2 = arith.constant 0 : index
    %c0_3 = arith.constant 0 : index
    %5 = arith.index_cast %4 : i32 to index
    %c0_4 = arith.constant 0 : index
    %c0_5 = arith.constant 0 : index
    %c0_6 = arith.constant 0 : index
    %6 = vector.load %arg2[%c0_2, %c0_3, %5, %c0_4, %c0_5, %c0_6] : memref<1x1x18x1x18x4xbf16, #tpu.memory_space<vmem>>, vector<1x1x16x1x16x4xbf16>
    %7 = vector.shape_cast %6 : vector<1x1x16x1x16x4xbf16> to vector<16x16x4xbf16>
    %8 = arith.extf %7 : vector<16x16x4xbf16> to vector<16x16x4xf32>
    %9 = vector.extract_strided_slice %2 {offsets = [0, 0, 0], sizes = [1, 1, 4], strides = [1, 1, 1]} : vector<3x3x4xf32> to vector<1x1x4xf32>
    %10 = vector.shape_cast %9 : vector<1x1x4xf32> to vector<4xf32>
    %11 = vector.shape_cast %10 : vector<4xf32> to vector<1x1x4xf32>
    %12 = vector.broadcast %11 : vector<1x1x4xf32> to vector<16x16x4xf32>
    %13 = arith.mulf %8, %12 : vector<16x16x4xf32>
    %14 = arith.addf %3, %13 : vector<16x16x4xf32>
    %c0_i32_7 = arith.constant 0 : i32
    %15 = arith.addi %1, %c0_i32_7 : i32
    %c0_8 = arith.constant 0 : index
    %c0_9 = arith.constant 0 : index
    %16 = arith.index_cast %15 : i32 to index
    %c0_10 = arith.constant 0 : index
    %c1 = arith.constant 1 : index
    %c0_11 = arith.constant 0 : index
    %17 = vector.load %arg2[%c0_8, %c0_9, %16, %c0_10, %c1, %c0_11] : memref<1x1x18x1x18x4xbf16, #tpu.memory_space<vmem>>, vector<1x1x16x1x16x4xbf16>
    %18 = vector.shape_cast %17 : vector<1x1x16x1x16x4xbf16> to vector<16x16x4xbf16>
    %19 = arith.extf %18 : vector<16x16x4xbf16> to vector<16x16x4xf32>
    %20 = vector.extract_strided_slice %2 {offsets = [0, 1, 0], sizes = [1, 1, 4], strides = [1, 1, 1]} : vector<3x3x4xf32> to vector<1x1x4xf32>
    %21 = vector.shape_cast %20 : vector<1x1x4xf32> to vector<4xf32>
    %22 = vector.shape_cast %21 : vector<4xf32> to vector<1x1x4xf32>
    %23 = vector.broadcast %22 : vector<1x1x4xf32> to vector<16x16x4xf32>
    %24 = arith.mulf %19, %23 : vector<16x16x4xf32>
    %25 = arith.addf %14, %24 : vector<16x16x4xf32>
    %c0_i32_12 = arith.constant 0 : i32
    %26 = arith.addi %1, %c0_i32_12 : i32
    %c0_13 = arith.constant 0 : index
    %c0_14 = arith.constant 0 : index
    %27 = arith.index_cast %26 : i32 to index
    %c0_15 = arith.constant 0 : index
    %c2 = arith.constant 2 : index
    %c0_16 = arith.constant 0 : index
    %28 = vector.load %arg2[%c0_13, %c0_14, %27, %c0_15, %c2, %c0_16] : memref<1x1x18x1x18x4xbf16, #tpu.memory_space<vmem>>, vector<1x1x16x1x16x4xbf16>
    %29 = vector.shape_cast %28 : vector<1x1x16x1x16x4xbf16> to vector<16x16x4xbf16>
    %30 = arith.extf %29 : vector<16x16x4xbf16> to vector<16x16x4xf32>
    %31 = vector.extract_strided_slice %2 {offsets = [0, 2, 0], sizes = [1, 1, 4], strides = [1, 1, 1]} : vector<3x3x4xf32> to vector<1x1x4xf32>
    %32 = vector.shape_cast %31 : vector<1x1x4xf32> to vector<4xf32>
    %33 = vector.shape_cast %32 : vector<4xf32> to vector<1x1x4xf32>
    %34 = vector.broadcast %33 : vector<1x1x4xf32> to vector<16x16x4xf32>
    %35 = arith.mulf %30, %34 : vector<16x16x4xf32>
    %36 = arith.addf %25, %35 : vector<16x16x4xf32>
    %c1_i32 = arith.constant 1 : i32
    %37 = arith.addi %1, %c1_i32 : i32
    %c0_17 = arith.constant 0 : index
    %c0_18 = arith.constant 0 : index
    %38 = arith.index_cast %37 : i32 to index
    %c0_19 = arith.constant 0 : index
    %c0_20 = arith.constant 0 : index
    %c0_21 = arith.constant 0 : index
    %39 = vector.load %arg2[%c0_17, %c0_18, %38, %c0_19, %c0_20, %c0_21] : memref<1x1x18x1x18x4xbf16, #tpu.memory_space<vmem>>, vector<1x1x16x1x16x4xbf16>
    %40 = vector.shape_cast %39 : vector<1x1x16x1x16x4xbf16> to vector<16x16x4xbf16>
    %41 = arith.extf %40 : vector<16x16x4xbf16> to vector<16x16x4xf32>
    %42 = vector.extract_strided_slice %2 {offsets = [1, 0, 0], sizes = [1, 1, 4], strides = [1, 1, 1]} : vector<3x3x4xf32> to vector<1x1x4xf32>
    %43 = vector.shape_cast %42 : vector<1x1x4xf32> to vector<4xf32>
    %44 = vector.shape_cast %43 : vector<4xf32> to vector<1x1x4xf32>
    %45 = vector.broadcast %44 : vector<1x1x4xf32> to vector<16x16x4xf32>
    %46 = arith.mulf %41, %45 : vector<16x16x4xf32>
    %47 = arith.addf %36, %46 : vector<16x16x4xf32>
    %c1_i32_22 = arith.constant 1 : i32
    %48 = arith.addi %1, %c1_i32_22 : i32
    %c0_23 = arith.constant 0 : index
    %c0_24 = arith.constant 0 : index
    %49 = arith.index_cast %48 : i32 to index
    %c0_25 = arith.constant 0 : index
    %c1_26 = arith.constant 1 : index
    %c0_27 = arith.constant 0 : index
    %50 = vector.load %arg2[%c0_23, %c0_24, %49, %c0_25, %c1_26, %c0_27] : memref<1x1x18x1x18x4xbf16, #tpu.memory_space<vmem>>, vector<1x1x16x1x16x4xbf16>
    %51 = vector.shape_cast %50 : vector<1x1x16x1x16x4xbf16> to vector<16x16x4xbf16>
    %52 = arith.extf %51 : vector<16x16x4xbf16> to vector<16x16x4xf32>
    %53 = vector.extract_strided_slice %2 {offsets = [1, 1, 0], sizes = [1, 1, 4], strides = [1, 1, 1]} : vector<3x3x4xf32> to vector<1x1x4xf32>
    %54 = vector.shape_cast %53 : vector<1x1x4xf32> to vector<4xf32>
    %55 = vector.shape_cast %54 : vector<4xf32> to vector<1x1x4xf32>
    %56 = vector.broadcast %55 : vector<1x1x4xf32> to vector<16x16x4xf32>
    %57 = arith.mulf %52, %56 : vector<16x16x4xf32>
    %58 = arith.addf %47, %57 : vector<16x16x4xf32>
    %c1_i32_28 = arith.constant 1 : i32
    %59 = arith.addi %1, %c1_i32_28 : i32
    %c0_29 = arith.constant 0 : index
    %c0_30 = arith.constant 0 : index
    %60 = arith.index_cast %59 : i32 to index
    %c0_31 = arith.constant 0 : index
    %c2_32 = arith.constant 2 : index
    %c0_33 = arith.constant 0 : index
    %61 = vector.load %arg2[%c0_29, %c0_30, %60, %c0_31, %c2_32, %c0_33] : memref<1x1x18x1x18x4xbf16, #tpu.memory_space<vmem>>, vector<1x1x16x1x16x4xbf16>
    %62 = vector.shape_cast %61 : vector<1x1x16x1x16x4xbf16> to vector<16x16x4xbf16>
    %63 = arith.extf %62 : vector<16x16x4xbf16> to vector<16x16x4xf32>
    %64 = vector.extract_strided_slice %2 {offsets = [1, 2, 0], sizes = [1, 1, 4], strides = [1, 1, 1]} : vector<3x3x4xf32> to vector<1x1x4xf32>
    %65 = vector.shape_cast %64 : vector<1x1x4xf32> to vector<4xf32>
    %66 = vector.shape_cast %65 : vector<4xf32> to vector<1x1x4xf32>
    %67 = vector.broadcast %66 : vector<1x1x4xf32> to vector<16x16x4xf32>
    %68 = arith.mulf %63, %67 : vector<16x16x4xf32>
    %69 = arith.addf %58, %68 : vector<16x16x4xf32>
    %c2_i32 = arith.constant 2 : i32
    %70 = arith.addi %1, %c2_i32 : i32
    %c0_34 = arith.constant 0 : index
    %c0_35 = arith.constant 0 : index
    %71 = arith.index_cast %70 : i32 to index
    %c0_36 = arith.constant 0 : index
    %c0_37 = arith.constant 0 : index
    %c0_38 = arith.constant 0 : index
    %72 = vector.load %arg2[%c0_34, %c0_35, %71, %c0_36, %c0_37, %c0_38] : memref<1x1x18x1x18x4xbf16, #tpu.memory_space<vmem>>, vector<1x1x16x1x16x4xbf16>
    %73 = vector.shape_cast %72 : vector<1x1x16x1x16x4xbf16> to vector<16x16x4xbf16>
    %74 = arith.extf %73 : vector<16x16x4xbf16> to vector<16x16x4xf32>
    %75 = vector.extract_strided_slice %2 {offsets = [2, 0, 0], sizes = [1, 1, 4], strides = [1, 1, 1]} : vector<3x3x4xf32> to vector<1x1x4xf32>
    %76 = vector.shape_cast %75 : vector<1x1x4xf32> to vector<4xf32>
    %77 = vector.shape_cast %76 : vector<4xf32> to vector<1x1x4xf32>
    %78 = vector.broadcast %77 : vector<1x1x4xf32> to vector<16x16x4xf32>
    %79 = arith.mulf %74, %78 : vector<16x16x4xf32>
    %80 = arith.addf %69, %79 : vector<16x16x4xf32>
    %c2_i32_39 = arith.constant 2 : i32
    %81 = arith.addi %1, %c2_i32_39 : i32
    %c0_40 = arith.constant 0 : index
    %c0_41 = arith.constant 0 : index
    %82 = arith.index_cast %81 : i32 to index
    %c0_42 = arith.constant 0 : index
    %c1_43 = arith.constant 1 : index
    %c0_44 = arith.constant 0 : index
    %83 = vector.load %arg2[%c0_40, %c0_41, %82, %c0_42, %c1_43, %c0_44] : memref<1x1x18x1x18x4xbf16, #tpu.memory_space<vmem>>, vector<1x1x16x1x16x4xbf16>
    %84 = vector.shape_cast %83 : vector<1x1x16x1x16x4xbf16> to vector<16x16x4xbf16>
    %85 = arith.extf %84 : vector<16x16x4xbf16> to vector<16x16x4xf32>
    %86 = vector.extract_strided_slice %2 {offsets = [2, 1, 0], sizes = [1, 1, 4], strides = [1, 1, 1]} : vector<3x3x4xf32> to vector<1x1x4xf32>
    %87 = vector.shape_cast %86 : vector<1x1x4xf32> to vector<4xf32>
    %88 = vector.shape_cast %87 : vector<4xf32> to vector<1x1x4xf32>
    %89 = vector.broadcast %88 : vector<1x1x4xf32> to vector<16x16x4xf32>
    %90 = arith.mulf %85, %89 : vector<16x16x4xf32>
    %91 = arith.addf %80, %90 : vector<16x16x4xf32>
    %c2_i32_45 = arith.constant 2 : i32
    %92 = arith.addi %1, %c2_i32_45 : i32
    %c0_46 = arith.constant 0 : index
    %c0_47 = arith.constant 0 : index
    %93 = arith.index_cast %92 : i32 to index
    %c0_48 = arith.constant 0 : index
    %c2_49 = arith.constant 2 : index
    %c0_50 = arith.constant 0 : index
    %94 = vector.load %arg2[%c0_46, %c0_47, %93, %c0_48, %c2_49, %c0_50] : memref<1x1x18x1x18x4xbf16, #tpu.memory_space<vmem>>, vector<1x1x16x1x16x4xbf16>
    %95 = vector.shape_cast %94 : vector<1x1x16x1x16x4xbf16> to vector<16x16x4xbf16>
    %96 = arith.extf %95 : vector<16x16x4xbf16> to vector<16x16x4xf32>
    %97 = vector.extract_strided_slice %2 {offsets = [2, 2, 0], sizes = [1, 1, 4], strides = [1, 1, 1]} : vector<3x3x4xf32> to vector<1x1x4xf32>
    %98 = vector.shape_cast %97 : vector<1x1x4xf32> to vector<4xf32>
    %99 = vector.shape_cast %98 : vector<4xf32> to vector<1x1x4xf32>
    %100 = vector.broadcast %99 : vector<1x1x4xf32> to vector<16x16x4xf32>
    %101 = arith.mulf %96, %100 : vector<16x16x4xf32>
    %102 = arith.addf %91, %101 : vector<16x16x4xf32>
    %c0_51 = arith.constant 0 : index
    %c0_52 = arith.constant 0 : index
    %103 = vector.load %arg4[%c0_51, %c0_52] : memref<1x4xf32, #tpu.memory_space<vmem>>, vector<1x4xf32>
    %104 = vector.shape_cast %103 : vector<1x4xf32> to vector<4xf32>
    %105 = vector.shape_cast %104 : vector<4xf32> to vector<1x1x4xf32>
    %106 = vector.broadcast %105 : vector<1x1x4xf32> to vector<16x16x4xf32>
    %107 = arith.addf %102, %106 : vector<16x16x4xf32>
    %cst_53 = arith.constant 0.000000e+00 : f32
    %108 = vector.broadcast %cst_53 : f32 to vector<16x16x4xf32>
    %109 = arith.maximumf %107, %108 : vector<16x16x4xf32>
    %110 = arith.truncf %109 : vector<16x16x4xf32> to vector<16x16x4xbf16>
    %111 = vector.shape_cast %110 : vector<16x16x4xbf16> to vector<256x4xbf16>
    %c0_54 = arith.constant 0 : index
    %c0_55 = arith.constant 0 : index
    %112 = vector.load %arg5[%c0_54, %c0_55] : memref<4x128xbf16, #tpu.memory_space<vmem>>, vector<4x128xbf16>
    %cst_56 = arith.constant dense<0.000000e+00> : vector<256x128xf32>
    %113 = tpu.matmul %111, %112, %cst_56 {dimension_numbers = #tpu.dot_dimension_numbers<[1], [0], [0], [1], [0, 0, 1, 1], [], []>} : vector<256x4xbf16>, vector<4x128xbf16>, vector<256x128xf32> -> vector<256x128xf32>
    %c0_57 = arith.constant 0 : index
    %c0_58 = arith.constant 0 : index
    %114 = vector.load %arg6[%c0_57, %c0_58] : memref<1x128xf32, #tpu.memory_space<vmem>>, vector<1x128xf32>
    %115 = vector.shape_cast %114 : vector<1x128xf32> to vector<128xf32>
    %116 = vector.shape_cast %115 : vector<128xf32> to vector<1x128xf32>
    %117 = vector.broadcast %116 : vector<1x128xf32> to vector<256x128xf32>
    %118 = arith.addf %113, %117 : vector<256x128xf32>
    %cst_59 = arith.constant 0.000000e+00 : f32
    %119 = vector.broadcast %cst_59 : f32 to vector<256x128xf32>
    %120 = arith.maximumf %118, %119 : vector<256x128xf32>
    %121 = arith.truncf %120 : vector<256x128xf32> to vector<256x128xbf16>
    %122 = vector.shape_cast %121 : vector<256x128xbf16> to vector<1x16x16x128xbf16>
    %c0_60 = arith.constant 0 : index
    %c0_61 = arith.constant 0 : index
    %c0_62 = arith.constant 0 : index
    %c0_63 = arith.constant 0 : index
    %123 = vector.load %arg7[%c0_60, %c0_61, %c0_62, %c0_63] : memref<1x16x16x128xbf16, #tpu.memory_space<vmem>>, vector<1x16x16x128xbf16>
    tpu.vector_store %arg7[%c0_60, %c0_61, %c0_62, %c0_63], %122 {strides = array<i32>} : memref<1x16x16x128xbf16, #tpu.memory_space<vmem>>, vector<1x16x16x128xbf16>,
    return
  }
  func.func @transform_0(%arg0: i32, %arg1: i32) -> (i32, i32, i32, i32, i32, i32) {
    %c0_i32 = arith.constant 0 : i32
    %c0_i32_0 = arith.constant 0 : i32
    %c0_i32_1 = arith.constant 0 : i32
    %c0_i32_2 = arith.constant 0 : i32
    %c0_i32_3 = arith.constant 0 : i32
    %c0_i32_4 = arith.constant 0 : i32
    return %arg0, %c0_i32, %c0_i32_0, %c0_i32_1, %c0_i32_2, %c0_i32_3 : i32, i32, i32, i32, i32, i32
  }
  func.func @transform_1(%arg0: i32, %arg1: i32) -> (i32, i32, i32) {
    %c0_i32 = arith.constant 0 : i32
    %c0_i32_0 = arith.constant 0 : i32
    %c0_i32_1 = arith.constant 0 : i32
    %c0_i32_2 = arith.constant 0 : i32
    return %c0_i32, %c0_i32_0, %c0_i32_1 : i32, i32, i32
  }
  func.func @transform_2(%arg0: i32, %arg1: i32) -> (i32, i32) {
    %c0_i32 = arith.constant 0 : i32
    %c0_i32_0 = arith.constant 0 : i32
    %c0_i32_1 = arith.constant 0 : i32
    return %c0_i32, %c0_i32_0 : i32, i32
  }
  func.func @transform_3(%arg0: i32, %arg1: i32) -> (i32, i32) {
    %c0_i32 = arith.constant 0 : i32
    %c0_i32_0 = arith.constant 0 : i32
    %c0_i32_1 = arith.constant 0 : i32
    return %c0_i32, %c0_i32_0 : i32, i32
  }
  func.func @transform_4(%arg0: i32, %arg1: i32) -> (i32, i32) {
    %c0_i32 = arith.constant 0 : i32
    %c0_i32_0 = arith.constant 0 : i32
    %c0_i32_1 = arith.constant 0 : i32
    return %c0_i32, %c0_i32_0 : i32, i32
  }
  func.func @transform_5(%arg0: i32, %arg1: i32) -> (i32, i32, i32, i32) {
    %c0_i32 = arith.constant 0 : i32
    %c0_i32_0 = arith.constant 0 : i32
    %c0_i32_1 = arith.constant 0 : i32
    return %arg0, %arg1, %c0_i32, %c0_i32_0 : i32, i32, i32, i32
  }
}

</mosaic_0001>

<bundles_post_ra>
// kernel: tpu_custom_call.1
= control target key start
LH: loop header
LB: loop body
LE: loop exit
PB: predicated region body
PF: predicated region fallthrough
CT: control target
= control target key end

     0   :  { %10 = vsyncpa [#allocation3], 0  ;;  %s4726_s0 = inlined_call_operand.vmem [shape: bf16[2,1,18,1,18,4], index: 0, kind: input, shape index: {}]   ;;  %s4727_s1 = inlined_call_operand.vmem [shape: f32[3,3,4], index: 1, kind: input, shape index: {}]   ;;  %s4728_s2 = inlined_call_operand.vmem [shape: f32[1,4], index: 2, kind: input, shape index: {}]   ;;  %s4729_s3 = inlined_call_operand.vmem [shape: bf16[4,128], index: 3, kind: input, shape index: {}]   ;;  %s4730_s4 = inlined_call_operand.vmem [shape: f32[1,128], index: 4, kind: input, shape index: {}]   ;;  %s4731_s5 = inlined_call_operand.hbm [shape: bf16[2,16,16,128], index: 5, kind: output, shape index: {}]  }
   0x1   :  { %12 = vsyncpa [#allocation3 + $0x1], 0  ;;  %s3574_s18 = smov 0   ;;  %s3576_s19 = smov 0  }
   0x2   :  { %s3578_s20 = smov 0   ;;  %s3580_s21 = smov 0  }
   0x3   :  { %s3582_s22 = smov 0   ;;  %s3584_s23 = smov 0  }
   0x4 LB: > { %s2909_s24 = sadd.s32 4294967295, %s3539_s23   ;;  %s2910_s25 = sadd.s32 4294967294, %s3539_s23   ;;  %s3539_s23 = sphi %s3584_s23, %s18_s23   ;;  %s3535_s22 = sphi %s3582_s22, %s4738_s22   ;;  %s3531_s21 = sphi %s3580_s21, %s4737_s21   ;;  %s3527_s20 = sphi %s3578_s20, %s4736_s20   ;;  %s3523_s19 = sphi %s3576_s19, %s4735_s19   ;;  %s3519_s18 = sphi %s3574_s18, %s4734_s18  }
   0x5   : > { %s30_s26 = sadd.s32 1, %s3535_s22  ;;  %s149_s27 = sadd.s32 1, %s3527_s20 }
   0x6   : > { %p32_p0 = scmp.ge.s32.totalorder %s30_s26, 2  ;;  %p159_p1 = scmp.ne.s32.totalorder %s3527_s20, %s3523_s19 }
   0x7   : > { %p160_p2 = scmp.eq.s32.totalorder %s2909_s24, 1  ;;  %p165_p3 = scmp.ne.s32.totalorder %s3523_s19, %s3519_s18 }
   0x8   : > { %s4740_s26 = smov (%p32_p0, %s30_s26), 0  ;;  %p166_p5 = scmp.eq.s32.totalorder %s2910_s25, 1 }
   0x9   : > { %p3614_p4 = por %p160_p2, %p159_p1  ;;  %s144_s29 = ssub.s32 %s3535_s22, %s4740_s26 }
   0xa   : > { %p2913_p6 = scmp.ge.s32.totalorder %s3539_s23, 1  ;;  %p147_p7 = scmp.eq.s32.totalorder %s144_s29, 0 }
   0xb   : > { %p3621_p8 = por %p166_p5, %p165_p3  ;;  %p204_p9 = scmp.lt.s32.totalorder %s3539_s23, 3 }
   0xc   : > { %s3627_s6 = scalar_select %p147_p7, %s3527_s20, %s149_s27  }
   0xd   : > { %p205_p10 = pnand %p2913_p6, %p204_p9 }
   0xe   : > { %v2395_v0 = vld [vmem:[%s4729_s3] sm:$0x3] (!%p205_p10)  ;;  %vm2452_vm0 = vcmask (!%p205_p10), 1041408   ;;  %p232_p11 = scmp.lt.s32.totalorder (!%p205_p10), %s3531_s21, 1  ;;  %v310_v1 = vlaneseq (!%p205_p10)  ;;  %v241_v5 = vld [vmem:[%s4727_s1 + $0x4] sm:$0x7] (!%p205_p10) }
   0xf   : > { %208 = sbr.rel (%p205_p10) target bundleno = 614 (0x266), region = 40  ;;  %3399 = vmatprep.subr.msk.bf16.mxu0 (!%p205_p10), %vm2452_vm0, %v2395_v0  ;;  %3400 = vmatprep.subr.msk.bf16.mxu1 (!%p205_p10), %vm2452_vm0, %v2395_v0  ;;  %v2454_v2 = vsel (!%p205_p10), %vm2452_vm0, %v2395_v0, 0  ;;  %v240_v4 = vld [vmem:[%s4727_s1] sm:$0x7] (!%p205_p10)  ;;  %v3643_v6 = vld [vmem:[%s4727_s1 + $0x8] sm:$0x7] (!%p205_p10) }
  0x10   : > { %3364 = vmatpush3.bf16.msra.mxu0 (!%p205_p10), %v2454_v2  ;;  %3398 = vmatpush3.bf16.msra.mxu1 (!%p205_p10), %v2454_v2  ;;  %v311_v3 = vshrl.u32 (!%p205_p10), %v310_v1, 7  ;;  %vm510_vm1 = vcmask (!%p205_p10), 1046528   ;;  %vm787_vm2 = vcmask (!%p205_p10), 1045504   ;;  %vm2403_vm3 = vcmask (!%p205_p10), 31744   ;;  %s229_s13 = sand.u32 (!%p205_p10), 1, %s3523_s19   ;;  %s3131_s16 = sshll.u32 (!%p205_p10), %s3531_s21, 11 }
  0x11   : > { %s4672_s27 = scalar_lea.hbm (!%p205_p10), %s4731_s5, %s3131_s16  ;;  %s3541_s7 = smov (!%p205_p10), [#allocation2]  }
  0x12   : > { %v312_v7 = vsub.s32 (!%p205_p10), 0, %v311_v3  ;;  %v412_v8 = vsub.s32 (!%p205_p10), 1, %v311_v3  ;;  %v3645_v9 = vsub.s32 (!%p205_p10), 2, %v311_v3  ;;  %s3465_s8 = sshll.u32 (!%p205_p10), %s3541_s7, 4  ;;  %s3466_s8 = int_to_ptr.vmem [resolvable:$false] %s3465_s8 }
  0x14   : > { %v3652_v10 = vrot.slane (!%p205_p10), %v240_v4, %v312_v7  ;;  %v3654_v11 = vrot.slane (!%p205_p10), %v240_v4, %v412_v8  ;;  %v3657_v12 = vrot.slane (!%p205_p10), %v240_v4, %v3645_v9  ;;  %v3659_v13 = vrot.slane (!%p205_p10), %v241_v5, %v312_v7 }
  0x15   : > { %v3664_v17 = vrot.slane (!%p205_p10), %v241_v5, %v412_v8  ;;  %v3667_v18 = vrot.slane (!%p205_p10), %v241_v5, %v3645_v9  ;;  %v3670_v19 = vrot.slane (!%p205_p10), %v3643_v6, %v312_v7  ;;  %v3673_v20 = vrot.slane (!%p205_p10), %v3643_v6, %v412_v8 }
  0x16   : > { %s233_s9 = scalar_select %p232_p11, %s3531_s21, 1 }
  0x17   : > { %s4680_s21 = scalar_lea.sflag [#allocation3], %s229_s13 }
  0x18   : > { %s3401_s14 = smul.u32 216, %s233_s9  ;;  %s3467_s9 = scalar_lea.vmem %s3466_s8, 4096 }
  0x1a   : > { %s3650_s25 = scalar_lea.vmem %s4726_s0, %s3401_s14  ;;  %s2914_s14 = sshll.u32 %s229_s13, 7 }
  0x1b   : > { %v3133_v14 = vld [vmem:[%s3650_s25] sm:$0xff]   ;;  %v378_v15 = vld [vmem:[%s3650_s25 + $0x8] sm:$0x1]  ;;  %v2916_v25 = vld [vmem:[%s3650_s25 + $0xc] sm:$0xff]   ;;  %s4626_s15 = scalar_lea.vmem [#allocation2], %s2914_s14 }
  0x1c   : > { %v655_v16 = vld [vmem:[%s3650_s25] sm:$0xe]  ;;  %v3134_v21 = vunpack.c.l.bf16 %v3133_v14  ;;  %v3135_v22 = vunpack.c.h.bf16 %v3133_v14  ;;  %v394_v23 = vunpack.c.l.bf16 %v378_v15  ;;  %v2948_v26 = vld [vmem:[%s3650_s25 + $0x14] sm:$0x1]  ;;  %v2964_v27 = vld [vmem:[%s3650_s25 + $0xc] sm:$0xe]  ;;  %v968_v28 = vunpack.c.l.bf16 %v2916_v25 }
  0x1d   : > { %v671_v24 = vunpack.c.l.bf16 %v655_v16  ;;  %v969_v29 = vunpack.c.h.bf16 %v2916_v25  ;;  %v1084_v30 = vunpack.c.l.bf16 %v2948_v26  ;;  %v1360_v31 = vunpack.c.l.bf16 %v2964_v27  ;;  %v3323_v56 = vld [vmem:[%s3650_s25 + $0x18] sm:$0xff]   ;;  %v3012_v1 = vld [vmem:[%s3650_s25 + $0x20] sm:$0x1]  ;;  %s2826_s17 = sshll.u32 %s4626_s15, 4  ;;  %s4674_s17 = int_to_ptr.vmem [resolvable:$true] %s2826_s17 }
  0x1e   : > { %v314_v32 = vmul.f32 %v3134_v21, %v3652_v10  ;;  %v315_v33 = vmul.f32 %v3135_v22, %v3652_v10  ;;  %v414_v34 = vmul.f32 %v3134_v21, %v3654_v11  ;;  %v415_v35 = vmul.f32 %v3135_v22, %v3654_v11  ;;  %s3461_s29 = scalar_lea.vmem %s4674_s17, 2048  ;;  %p3468_p1 = scmp.lt.s32.totalorder %s4674_s17, %s3466_s8 }
  0x1f   : > { %v416_v36 = vmul.f32 %v3654_v11, %v394_v23  ;;  %v691_v37 = vmul.f32 %v3657_v12, %v671_v24  ;;  %v692_v38 = vmul.f32 %v3135_v22, %v3657_v12  ;;  %v693_v39 = vmul.f32 %v3657_v12, %v394_v23  ;;  %v3028_v24 = vld [vmem:[%s3650_s25 + $0x18] sm:$0xe]  ;;  %p3462_p12 = scmp.ne.s32.totalorder %s4674_s17, %s3461_s29  ;;  %p3469_p2 = scmp.lt.s32.totalorder %s3467_s9, %s3461_s29 }
  0x20   : > { %v511_v40 = vrot.slane %v414_v34, 1  ;;  %v512_v41 = vrot.slane %v415_v35, 1  ;;  %v1004_v42 = vmul.f32 %v3659_v13, %v968_v28  ;;  %v1005_v43 = vmul.f32 %v3659_v13, %v969_v29 }
  0x21   : > { %v514_v44 = vrot.slane %v416_v36, 1  ;;  %v788_v45 = vrot.slane %v691_v37, 2  ;;  %v789_v46 = vrot.slane %v692_v38, 2  ;;  %v791_v47 = vrot.slane %v693_v39, 2  ;;  %p3463_p13 = pnand %p3462_p12, %p3614_p4  ;;  %p3470_p3 = por %p3469_p2, %p3468_p1 }
  0x22   : > { %v513_v48 = vsel %vm510_vm1, %v511_v40, %v512_v41  ;;  %v1104_v49 = vmul.f32 %v3664_v17, %v968_v28  ;;  %v1105_v50 = vmul.f32 %v3664_v17, %v969_v29  ;;  %v1106_v51 = vmul.f32 %v3664_v17, %v1084_v30 }
  0x23   : > { %v515_v52 = vsel %vm510_vm1, %v512_v41, %v514_v44  ;;  %v623_v53 = vadd.f32 %v513_v48, %v314_v32  ;;  %v790_v54 = vsel %vm787_vm2, %v788_v45, %v789_v46  ;;  %v792_v55 = vsel %vm787_vm2, %v789_v46, %v791_v47  ;;  %v386_v46 = vld [vmem:[%s3650_s25 + $0x68] sm:$0x1]  ;;  %p3464_p0 = pneg %p3463_p13 }
  0x24   : > { %v624_v57 = vadd.f32 %v515_v52, %v315_v33  ;;  %v1200_v58 = vrot.slane %v1104_v49, 1  ;;  %v1201_v59 = vrot.slane %v1105_v50, 1  ;;  %v1203_v60 = vrot.slane %v1106_v51, 1 }
  0x25   : > { %v900_v61 = vadd.f32 %v790_v54, %v623_v53  ;;  %v1380_v62 = vmul.f32 %v3667_v18, %v1360_v31  ;;  %v1381_v63 = vmul.f32 %v3667_v18, %v969_v29  ;;  %v1382_v0 = vmul.f32 %v3667_v18, %v1084_v30  ;;  %v3311_v29 = vld [vmem:[%s3650_s25 + $0x60] sm:$0xff]   ;;  %p3471_p5 = pnand %p3470_p3, %p3464_p0 }
  0x26   : > { %v901_v2 = vadd.f32 %v792_v55, %v624_v57  ;;  %v1202_v3 = vsel %vm510_vm1, %v1200_v58, %v1201_v59  ;;  %v1204_v4 = vsel %vm510_vm1, %v1201_v59, %v1203_v60  ;;  %v3702_v5 = vunpack.c.l.bf16 %v3323_v56  ;;  %v663_v53 = vld [vmem:[%s3650_s25 + $0x60] sm:$0xe]  ;;  %v3738_v60 = vld [vmem:[%s4728_s2] ss:$0 sm:$0xff] }
  0x27   : > { %v1036_v7 = vadd.f32 %v1004_v42, %v900_v61  ;;  %v1476_v8 = vrot.slane %v1380_v62, 2  ;;  %v1477_v14 = vrot.slane %v1381_v63, 2  ;;  %v1479_v15 = vrot.slane %v1382_v0, 2 }
  0x28   : > { %v1037_v16 = vadd.f32 %v1005_v43, %v901_v2  ;;  %v3704_v21 = vunpack.c.h.bf16 %v3323_v56  ;;  %v1692_v22 = vmul.f32 %v3702_v5, %v3670_v19  ;;  %v1772_v23 = vunpack.c.l.bf16 %v3012_v1 }
  0x29   : > { %v1312_v25 = vadd.f32 %v1202_v3, %v1036_v7  ;;  %v1478_v26 = vsel %vm787_vm2, %v1476_v8, %v1477_v14  ;;  %v1480_v27 = vsel %vm787_vm2, %v1477_v14, %v1479_v15  ;;  %v1792_v28 = vmul.f32 %v3702_v5, %v3673_v20  ;;  %v2932_v3 = vld [vmem:[%s3650_s25 + $0x6c] sm:$0xff]  }
  0x2a   : > { %v1313_v30 = vadd.f32 %v1204_v4, %v1037_v16  ;;  %v1693_v31 = vmul.f32 %v3704_v21, %v3670_v19  ;;  %v1793_v32 = vmul.f32 %v3704_v21, %v3673_v20  ;;  %v1794_v33 = vmul.f32 %v3673_v20, %v1772_v23 }
  0x2b   : > { %v1588_v34 = vadd.f32 %v1478_v26, %v1312_v25  ;;  %v1888_v35 = vrot.slane %v1792_v28, 1  ;;  %v2048_v36 = vunpack.c.l.bf16 %v3028_v24  ;;  %v3721_v37 = vrot.slane %v3643_v6, %v3645_v9  ;;  %v2956_v28 = vld [vmem:[%s3650_s25 + $0x74] sm:$0x1] }
  0x2c   : > { %v1589_v38 = vadd.f32 %v1480_v27, %v1313_v30  ;;  %v1889_v39 = vrot.slane %v1793_v32, 1  ;;  %v1891_v40 = vrot.slane %v1794_v33, 1  ;;  %v3150_v41 = vunpack.c.l.bf16 %v3311_v29 }
  0x2d   : > { %v1724_v42 = vadd.f32 %v1692_v22, %v1588_v34  ;;  %v2068_v43 = vmul.f32 %v3721_v37, %v2048_v36  ;;  %v2069_v44 = vmul.f32 %v3704_v21, %v3721_v37  ;;  %v2070_v45 = vmul.f32 %v3721_v37, %v1772_v23 }
  0x2e   : > { %v1725_v47 = vadd.f32 %v1693_v31, %v1589_v38  ;;  %v1890_v48 = vsel %vm510_vm1, %v1888_v35, %v1889_v39  ;;  %v1892_v6 = vsel %vm510_vm1, %v1889_v39, %v1891_v40  ;;  %v3151_v9 = vunpack.c.h.bf16 %v3311_v29  ;;  %v2972_v38 = vld [vmem:[%s3650_s25 + $0x6c] sm:$0xe] }
  0x2f   : > { %v2000_v49 = vadd.f32 %v1890_v48, %v1724_v42  ;;  %v2164_v50 = vrot.slane %v2068_v43, 2  ;;  %v2165_v51 = vrot.slane %v2069_v44, 2  ;;  %v2167_v52 = vrot.slane %v2070_v45, 2 }
  0x30   : > { %v2001_v54 = vadd.f32 %v1892_v6, %v1725_v47  ;;  %v330_v55 = vmul.f32 %v3150_v41, %v3652_v10  ;;  %v331_v56 = vmul.f32 %v3151_v9, %v3652_v10  ;;  %v402_v57 = vunpack.c.l.bf16 %v386_v46  ;;  %v3327_v47 = vld [vmem:[%s3650_s25 + $0x78] sm:$0xff]  }
  0x31   : > { %v2166_v58 = vsel %vm787_vm2, %v2164_v50, %v2165_v51  ;;  %v2168_v59 = vsel %vm787_vm2, %v2165_v51, %v2167_v52  ;;  %v438_v61 = vmul.f32 %v3150_v41, %v3654_v11  ;;  %v439_v62 = vmul.f32 %v3151_v9, %v3654_v11 }
  0x32   : > { %v2276_v63 = vadd.f32 %v2166_v58, %v2000_v49  ;;  %v2277_v0 = vadd.f32 %v2168_v59, %v2001_v54  ;;  %v440_v1 = vmul.f32 %v3654_v11, %v402_v57  ;;  %v679_v2 = vunpack.c.l.bf16 %v663_v53  ;;  %v3020_v58 = vld [vmem:[%s3650_s25 + $0x80] sm:$0x1] }
  0x33   : > { %v551_v4 = vrot.slane %v438_v61, 1  ;;  %v552_v7 = vrot.slane %v439_v62, 1  ;;  %v716_v8 = vmul.f32 %v3151_v9, %v3657_v12  ;;  %v717_v14 = vmul.f32 %v3657_v12, %v402_v57 }
  0x34   : > { %v2315_v15 = vadd.f32 %v3738_v60, %v2276_v63  ;;  %v2316_v16 = vadd.f32 %v3738_v60, %v2277_v0  ;;  %v554_v22 = vrot.slane %v440_v1, 1  ;;  %v715_v23 = vmul.f32 %v3657_v12, %v679_v2  ;;  %v3036_v0 = vld [vmem:[%s3650_s25 + $0x78] sm:$0xe] }
  0x35   : > { %v553_v24 = vsel %vm510_vm1, %v551_v4, %v552_v7  ;;  %v829_v25 = vrot.slane %v716_v8, 2  ;;  %v831_v26 = vrot.slane %v717_v14, 2  ;;  %v984_v27 = vunpack.c.l.bf16 %v2932_v3 }
  0x36   : > { %v2347_v29 = vmax.f32 %v2315_v15, 0.0  ;;  %v2348_v30 = vmax.f32 %v2316_v16, 0.0  ;;  %v555_v31 = vsel %vm510_vm1, %v552_v7, %v554_v22  ;;  %v639_v32 = vadd.f32 %v553_v24, %v330_v55 }
  0x37   : > { %v640_v33 = vadd.f32 %v555_v31, %v331_v56  ;;  %v828_v34 = vrot.slane %v715_v23, 2  ;;  %v832_v35 = vsel %vm787_vm2, %v829_v25, %v831_v26  ;;  %v985_v36 = vunpack.c.h.bf16 %v2932_v3 }
  0x38   : > { %v2379_v39 = vpack.c.bf16 %v2348_v30, %v2347_v29  ;;  %v1020_v40 = vmul.f32 %v3659_v13, %v984_v27  ;;  %v1092_v41 = vunpack.c.l.bf16 %v2956_v28  ;;  %v1128_v42 = vmul.f32 %v3664_v17, %v984_v27  ;;  %v248_v29 = vld [vmem:[%s3650_s25 + $0xc] sm:$0xff]  }
  0x39   : > { %v830_v43 = vsel %vm787_vm2, %v828_v34, %v829_v25  ;;  %v917_v44 = vadd.f32 %v832_v35, %v640_v33  ;;  %v1021_v45 = vmul.f32 %v3659_v13, %v985_v36  ;;  %v1129_v46 = vmul.f32 %v3664_v17, %v985_v36  ;;  %v379_v34 = vld [vmem:[%s3650_s25 + $0x14] sm:$0x1] }
  0x3a   : > { %3365 = vmatprep.mubr.msk.bf16.mxu0 %vm2403_vm3, %v2379_v39  ;;  %v916_v48 = vadd.f32 %v830_v43, %v639_v32  ;;  %v1130_v6 = vmul.f32 %v3664_v17, %v1092_v41  ;;  %v1240_v9 = vrot.slane %v1128_v42, 1  ;;  %v1368_v49 = vunpack.c.l.bf16 %v2972_v38 }
  0x3b   : > { %v1053_v50 = vadd.f32 %v1021_v45, %v917_v44  ;;  %v1241_v51 = vrot.slane %v1129_v46, 1  ;;  %v1405_v52 = vmul.f32 %v3667_v18, %v985_v36  ;;  %v1406_v53 = vmul.f32 %v3667_v18, %v1092_v41 }
  0x3c   : > { %v1052_v54 = vadd.f32 %v1020_v40, %v916_v48  ;;  %v1243_v55 = vrot.slane %v1130_v6, 1  ;;  %v1404_v56 = vmul.f32 %v3667_v18, %v1368_v49  ;;  %v3765_v57 = vunpack.c.l.bf16 %v3327_v47  ;;  %v656_v48 = vld [vmem:[%s3650_s25 + $0xc] sm:$0xe] }
  0x3d   : > { %v1242_v59 = vsel %vm510_vm1, %v1240_v9, %v1241_v51  ;;  %v1517_v61 = vrot.slane %v1405_v52, 2  ;;  %v1519_v62 = vrot.slane %v1406_v53, 2  ;;  %v3769_v63 = vunpack.c.h.bf16 %v3327_v47 }
  0x3e   : > { %v1244_v1 = vsel %vm510_vm1, %v1241_v51, %v1243_v55  ;;  %v1328_v2 = vadd.f32 %v1242_v59, %v1052_v54  ;;  %v1516_v3 = vrot.slane %v1404_v56, 2  ;;  %v1708_v4 = vmul.f32 %v3765_v57, %v3670_v19 }
  0x3f   : > { %v1329_v7 = vadd.f32 %v1244_v1, %v1053_v50  ;;  %v1520_v8 = vsel %vm787_vm2, %v1517_v61, %v1519_v62  ;;  %v1709_v14 = vmul.f32 %v3769_v63, %v3670_v19  ;;  %v1780_v15 = vunpack.c.l.bf16 %v3020_v58 }
  0x40   : > { %v1518_v16 = vsel %vm787_vm2, %v1516_v3, %v1517_v61  ;;  %v1816_v22 = vmul.f32 %v3765_v57, %v3673_v20  ;;  %v1817_v23 = vmul.f32 %v3769_v63, %v3673_v20  ;;  %v2056_v24 = vunpack.c.l.bf16 %v3036_v0 }
  0x41   : > { %v1604_v25 = vadd.f32 %v1518_v16, %v1328_v2  ;;  %v1605_v26 = vadd.f32 %v1520_v8, %v1329_v7  ;;  %v1818_v27 = vmul.f32 %v3673_v20, %v1780_v15  ;;  %v2093_v28 = vmul.f32 %v3769_v63, %v3721_v37  ;;  %v2949_v8 = vld [vmem:[%s3650_s25 + $0x20] sm:$0x1] }
  0x42   : > { %v1928_v30 = vrot.slane %v1816_v22, 1  ;;  %v1929_v31 = vrot.slane %v1817_v23, 1  ;;  %v2092_v32 = vmul.f32 %v3721_v37, %v2056_v24  ;;  %v2094_v33 = vmul.f32 %v3721_v37, %v1780_v15 }
  0x43   : > { %v1740_v35 = vadd.f32 %v1708_v4, %v1604_v25  ;;  %v1741_v36 = vadd.f32 %v1709_v14, %v1605_v26  ;;  %v1931_v38 = vrot.slane %v1818_v27, 1  ;;  %v2205_v39 = vrot.slane %v2093_v28, 2  ;;  %v2965_v27 = vld [vmem:[%s3650_s25 + $0x18] sm:$0xe] }
  0x44   : > { %v1930_v40 = vsel %vm510_vm1, %v1928_v30, %v1929_v31  ;;  %v2204_v41 = vrot.slane %v2092_v32, 2  ;;  %v2207_v42 = vrot.slane %v2094_v33, 2  ;;  %v280_v43 = vunpack.c.l.bf16 %v248_v29 }
  0x45   : > { %v1932_v44 = vsel %vm510_vm1, %v1929_v31, %v1931_v38  ;;  %v2016_v45 = vadd.f32 %v1930_v40, %v1740_v35  ;;  %v281_v46 = vunpack.c.h.bf16 %v248_v29  ;;  %v395_v47 = vunpack.c.l.bf16 %v379_v34 }
  0x46   : > { %v2017_v6 = vadd.f32 %v1932_v44, %v1741_v36  ;;  %v2206_v9 = vsel %vm787_vm2, %v2204_v41, %v2205_v39  ;;  %v2208_v49 = vsel %vm787_vm2, %v2205_v39, %v2207_v42  ;;  %v316_v50 = vmul.f32 %v3652_v10, %v280_v43  ;;  %v2982_v41 = vld [vmem:[%s3650_s25 + $0x24] sm:$0xff]  }
  0x47   : > { %v2292_v51 = vadd.f32 %v2206_v9, %v2016_v45  ;;  %v317_v52 = vmul.f32 %v3652_v10, %v281_v46  ;;  %v417_v53 = vmul.f32 %v3654_v11, %v280_v43  ;;  %v418_v54 = vmul.f32 %v3654_v11, %v281_v46  ;;  %v3013_v9 = vld [vmem:[%s3650_s25 + $0x2c] sm:$0x1] }
  0x48   : > { %v2293_v55 = vadd.f32 %v2208_v49, %v2017_v6  ;;  %v419_v56 = vmul.f32 %v3654_v11, %v395_v47  ;;  %v672_v58 = vunpack.c.l.bf16 %v656_v48  ;;  %v695_v59 = vmul.f32 %v3657_v12, %v281_v46 }
  0x49   : > { %v2331_v61 = vadd.f32 %v3738_v60, %v2292_v51  ;;  %v516_v62 = vrot.slane %v417_v53, 1  ;;  %v517_v0 = vrot.slane %v418_v54, 1  ;;  %v696_v1 = vmul.f32 %v3657_v12, %v395_v47 }
  0x4a   : > { %v2332_v2 = vadd.f32 %v3738_v60, %v2293_v55  ;;  %v519_v3 = vrot.slane %v419_v56, 1  ;;  %v694_v4 = vmul.f32 %v3657_v12, %v672_v58  ;;  %v794_v7 = vrot.slane %v695_v59, 2  ;;  %v3029_v58 = vld [vmem:[%s3650_s25 + $0x24] sm:$0xe] }
  0x4b   : > { %v2363_v14 = vmax.f32 %v2331_v61, 0.0  ;;  %v518_v15 = vsel %vm510_vm1, %v516_v62, %v517_v0  ;;  %v796_v16 = vrot.slane %v696_v1, 2  ;;  %v1006_v22 = vmul.f32 %v3702_v5, %v3659_v13 }
  0x4c   : > { %v2364_v23 = vmax.f32 %v2332_v2, 0.0  ;;  %v520_v24 = vsel %vm510_vm1, %v517_v0, %v519_v3  ;;  %v625_v25 = vadd.f32 %v518_v15, %v316_v50  ;;  %v793_v26 = vrot.slane %v694_v4, 2 }
  0x4d   : > { %v626_v28 = vadd.f32 %v520_v24, %v317_v52  ;;  %v797_v29 = vsel %vm787_vm2, %v794_v7, %v796_v16  ;;  %v1007_v30 = vmul.f32 %v3704_v21, %v3659_v13  ;;  %v1085_v31 = vunpack.c.l.bf16 %v2949_v8  ;;  %v264_v16 = vld [vmem:[%s3650_s25 + $0x6c] sm:$0xff]  }
  0x4e   : > { %v2387_v32 = vpack.c.bf16 %v2364_v23, %v2363_v14  ;;  %v795_v33 = vsel %vm787_vm2, %v793_v26, %v794_v7  ;;  %v1107_v34 = vmul.f32 %v3702_v5, %v3664_v17  ;;  %v1108_v35 = vmul.f32 %v3704_v21, %v3664_v17 }
  0x4f   : > { %v902_v36 = vadd.f32 %v795_v33, %v625_v25  ;;  %v903_v38 = vadd.f32 %v797_v29, %v626_v28  ;;  %v1109_v39 = vmul.f32 %v3664_v17, %v1085_v31  ;;  %v1361_v40 = vunpack.c.l.bf16 %v2965_v27 }
  0x50   : > { %3381 = vmatprep.mubr.msk.bf16.mxu1 %vm2403_vm3, %v2387_v32  ;;  %v1205_v42 = vrot.slane %v1107_v34, 1  ;;  %v1206_v43 = vrot.slane %v1108_v35, 1  ;;  %v1384_v44 = vmul.f32 %v3704_v21, %v3667_v18  ;;  %v1385_v45 = vmul.f32 %v3667_v18, %v1085_v31 }
  0x51   : > { %v1038_v46 = vadd.f32 %v1006_v22, %v902_v36  ;;  %v1039_v47 = vadd.f32 %v1007_v30, %v903_v38  ;;  %v1208_v48 = vrot.slane %v1109_v39, 1  ;;  %v1383_v6 = vmul.f32 %v3667_v18, %v1361_v40  ;;  %v387_v30 = vld [vmem:[%s3650_s25 + $0x74] sm:$0x1]  ;;  %v664_v40 = vld [vmem:[%s3650_s25 + $0x6c] sm:$0xe] }
  0x52   : > { %v1207_v49 = vsel %vm510_vm1, %v1205_v42, %v1206_v43  ;;  %v1482_v50 = vrot.slane %v1384_v44, 2  ;;  %v1484_v51 = vrot.slane %v1385_v45, 2  ;;  %v1658_v52 = vunpack.c.l.bf16 %v2982_v41 }
  0x53   : > { %v1209_v53 = vsel %vm510_vm1, %v1206_v43, %v1208_v48  ;;  %v1314_v54 = vadd.f32 %v1207_v49, %v1038_v46  ;;  %v1481_v55 = vrot.slane %v1383_v6, 2  ;;  %v1659_v56 = vunpack.c.h.bf16 %v2982_v41 }
  0x54   : > { %v1315_v59 = vadd.f32 %v1209_v53, %v1039_v47  ;;  %v1485_v61 = vsel %vm787_vm2, %v1482_v50, %v1484_v51  ;;  %v1694_v62 = vmul.f32 %v3670_v19, %v1658_v52  ;;  %v1773_v0 = vunpack.c.l.bf16 %v3013_v9 }
  0x55   : > { %v1483_v1 = vsel %vm787_vm2, %v1481_v55, %v1482_v50  ;;  %v1695_v2 = vmul.f32 %v3670_v19, %v1659_v56  ;;  %v1795_v3 = vmul.f32 %v3673_v20, %v1658_v52  ;;  %v1796_v4 = vmul.f32 %v3673_v20, %v1659_v56 }
  0x56   : > { %v1590_v7 = vadd.f32 %v1483_v1, %v1314_v54  ;;  %v1591_v8 = vadd.f32 %v1485_v61, %v1315_v59  ;;  %v1797_v14 = vmul.f32 %v3673_v20, %v1773_v0  ;;  %v2049_v15 = vunpack.c.l.bf16 %v3029_v58 }
  0x57   : > { %v1893_v22 = vrot.slane %v1795_v3, 1  ;;  %v1894_v23 = vrot.slane %v1796_v4, 1  ;;  %v2072_v24 = vmul.f32 %v3721_v37, %v1659_v56  ;;  %v2073_v25 = vmul.f32 %v3721_v37, %v1773_v0 }
  0x58   : > { %v1726_v26 = vadd.f32 %v1694_v62, %v1590_v7  ;;  %v1727_v27 = vadd.f32 %v1695_v2, %v1591_v8  ;;  %v1896_v28 = vrot.slane %v1797_v14, 1  ;;  %v2071_v29 = vmul.f32 %v3721_v37, %v2049_v15  ;;  %v2957_v2 = vld [vmem:[%s3650_s25 + $0x80] sm:$0x1]  ;;  %v2973_v14 = vld [vmem:[%s3650_s25 + $0x78] sm:$0xe] }
  0x59   : > { %v1895_v31 = vsel %vm510_vm1, %v1893_v22, %v1894_v23  ;;  %v2170_v32 = vrot.slane %v2072_v24, 2  ;;  %v2172_v33 = vrot.slane %v2073_v25, 2  ;;  %v296_v34 = vunpack.c.l.bf16 %v264_v16 }
  0x5a   : > { %v1897_v35 = vsel %vm510_vm1, %v1894_v23, %v1896_v28  ;;  %v2002_v36 = vadd.f32 %v1895_v31, %v1726_v26  ;;  %v2169_v38 = vrot.slane %v2071_v29, 2  ;;  %v297_v39 = vunpack.c.h.bf16 %v264_v16 }
  0x5b   : > { %v2003_v41 = vadd.f32 %v1897_v35, %v1727_v27  ;;  %v2173_v42 = vsel %vm787_vm2, %v2170_v32, %v2172_v33  ;;  %v332_v43 = vmul.f32 %v3652_v10, %v296_v34  ;;  %v403_v44 = vunpack.c.l.bf16 %v387_v30 }
  0x5c   : > { %v2171_v45 = vsel %vm787_vm2, %v2169_v38, %v2170_v32  ;;  %v333_v46 = vmul.f32 %v3652_v10, %v297_v39  ;;  %v441_v47 = vmul.f32 %v3654_v11, %v296_v34  ;;  %v442_v48 = vmul.f32 %v3654_v11, %v297_v39  ;;  %v2998_v32 = vld [vmem:[%s3650_s25 + $0x84] sm:$0xff]   ;;  %v3021_v38 = vld [vmem:[%s3650_s25 + $0x8c] sm:$0x1] }
  0x5d   : > { %v2278_v6 = vadd.f32 %v2171_v45, %v2002_v36  ;;  %v2279_v9 = vadd.f32 %v2173_v42, %v2003_v41  ;;  %v443_v49 = vmul.f32 %v3654_v11, %v403_v44  ;;  %v680_v50 = vunpack.c.l.bf16 %v664_v40 }
  0x5e   : > { %v556_v51 = vrot.slane %v441_v47, 1  ;;  %v557_v52 = vrot.slane %v442_v48, 1  ;;  %v719_v53 = vmul.f32 %v3657_v12, %v297_v39  ;;  %v720_v54 = vmul.f32 %v3657_v12, %v403_v44 }
  0x5f   : > { %v2317_v55 = vadd.f32 %v3738_v60, %v2278_v6  ;;  %v2318_v56 = vadd.f32 %v3738_v60, %v2279_v9  ;;  %v559_v58 = vrot.slane %v443_v49, 1  ;;  %v718_v59 = vmul.f32 %v3657_v12, %v680_v50 }
  0x60   : > { %v558_v61 = vsel %vm510_vm1, %v556_v51, %v557_v52  ;;  %v834_v62 = vrot.slane %v719_v53, 2  ;;  %v836_v0 = vrot.slane %v720_v54, 2  ;;  %v1022_v1 = vmul.f32 %v3765_v57, %v3659_v13  ;;  %v3037_v53 = vld [vmem:[%s3650_s25 + $0x84] sm:$0xe] }
  0x61   : > { %v2349_v3 = vmax.f32 %v2317_v55, 0.0  ;;  %v2350_v4 = vmax.f32 %v2318_v56, 0.0  ;;  %v560_v7 = vsel %vm510_vm1, %v557_v52, %v559_v58  ;;  %v641_v8 = vadd.f32 %v558_v61, %v332_v43 }
  0x62   : > { %v642_v15 = vadd.f32 %v560_v7, %v333_v46  ;;  %v833_v16 = vrot.slane %v718_v59, 2  ;;  %v837_v22 = vsel %vm787_vm2, %v834_v62, %v836_v0  ;;  %v1023_v23 = vmul.f32 %v3769_v63, %v3659_v13  ;;  %v380_v7 = vld [vmem:[%s3650_s25 + $0x20] sm:$0x1] }
  0x63   : > { %v2380_v24 = vpack.c.bf16 %v2350_v4, %v2349_v3  ;;  %v1093_v25 = vunpack.c.l.bf16 %v2957_v2  ;;  %v1131_v26 = vmul.f32 %v3765_v57, %v3664_v17  ;;  %v1132_v27 = vmul.f32 %v3769_v63, %v3664_v17 }
  0x64   : > { %v835_v28 = vsel %vm787_vm2, %v833_v16, %v834_v62  ;;  %v919_v29 = vadd.f32 %v837_v22, %v642_v15  ;;  %v1369_v30 = vunpack.c.l.bf16 %v2973_v14  ;;  %v1408_v31 = vmul.f32 %v3769_v63, %v3667_v18 }
  0x65   : > { %3366 = vmatmul.mubr.msk.bf16.vlgmr.msra.gmra.mrb[0].mxu0 %vm2403_vm3, %v2380_v24  ;;  %v918_v33 = vadd.f32 %v835_v28, %v641_v8  ;;  %v1133_v34 = vmul.f32 %v3664_v17, %v1093_v25  ;;  %v1245_v35 = vrot.slane %v1131_v26, 1  ;;  %v1246_v36 = vrot.slane %v1132_v27, 1  ;;  %v657_v26 = vld [vmem:[%s3650_s25 + $0x18] sm:$0xe] }
  0x66   : > { %v1055_v39 = vadd.f32 %v1023_v23, %v919_v29  ;;  %v1407_v40 = vmul.f32 %v3667_v18, %v1369_v30  ;;  %v1409_v41 = vmul.f32 %v3667_v18, %v1093_v25  ;;  %v1522_v42 = vrot.slane %v1408_v31, 2 }
  0x67   : > { %v1054_v43 = vadd.f32 %v1022_v1, %v918_v33  ;;  %v1247_v44 = vsel %vm510_vm1, %v1245_v35, %v1246_v36  ;;  %v1248_v45 = vrot.slane %v1133_v34, 1  ;;  %v1674_v46 = vunpack.c.l.bf16 %v2998_v32 }
  0x68   : > { %v1521_v47 = vrot.slane %v1407_v40, 2  ;;  %v1524_v48 = vrot.slane %v1409_v41, 2  ;;  %v1675_v6 = vunpack.c.h.bf16 %v2998_v32  ;;  %v1781_v9 = vunpack.c.l.bf16 %v3021_v38 }
  0x69   : > { %v1249_v49 = vsel %vm510_vm1, %v1246_v36, %v1248_v45  ;;  %v1330_v50 = vadd.f32 %v1247_v44, %v1054_v43  ;;  %v1710_v51 = vmul.f32 %v3670_v19, %v1674_v46  ;;  %v1819_v52 = vmul.f32 %v3673_v20, %v1674_v46  ;;  %v2920_v44 = vld [vmem:[%s3650_s25 + $0x24] sm:$0xff]  }
  0x6a   : > { %v1331_v54 = vadd.f32 %v1249_v49, %v1055_v39  ;;  %v1523_v55 = vsel %vm787_vm2, %v1521_v47, %v1522_v42  ;;  %v1525_v56 = vsel %vm787_vm2, %v1522_v42, %v1524_v48  ;;  %v1711_v58 = vmul.f32 %v3670_v19, %v1675_v6 }
  0x6b   : > { %v1606_v59 = vadd.f32 %v1523_v55, %v1330_v50  ;;  %v1820_v61 = vmul.f32 %v3673_v20, %v1675_v6  ;;  %v1821_v62 = vmul.f32 %v3673_v20, %v1781_v9  ;;  %v1933_v0 = vrot.slane %v1819_v52, 1 }
  0x6c   : > { %v1607_v1 = vadd.f32 %v1525_v56, %v1331_v54  ;;  %v2057_v2 = vunpack.c.l.bf16 %v3037_v53  ;;  %v2096_v3 = vmul.f32 %v3721_v37, %v1675_v6  ;;  %v2097_v4 = vmul.f32 %v3721_v37, %v1781_v9  ;;  %v2950_v53 = vld [vmem:[%s3650_s25 + $0x2c] sm:$0x1] }
  0x6d   : > { %v1742_v8 = vadd.f32 %v1710_v51, %v1606_v59  ;;  %v1934_v14 = vrot.slane %v1820_v61, 1  ;;  %v1936_v15 = vrot.slane %v1821_v62, 1  ;;  %v318_v16 = vmul.f32 %v3702_v5, %v3652_v10 }
  0x6e   : > { %v1743_v22 = vadd.f32 %v1711_v58, %v1607_v1  ;;  %v2095_v23 = vmul.f32 %v3721_v37, %v2057_v2  ;;  %v2210_v24 = vrot.slane %v2096_v3, 2  ;;  %v2212_v25 = vrot.slane %v2097_v4, 2  ;;  %v2966_v1 = vld [vmem:[%s3650_s25 + $0x24] sm:$0xe] }
  0x6f   : > { %v1935_v27 = vsel %vm510_vm1, %v1933_v0, %v1934_v14  ;;  %v1937_v28 = vsel %vm510_vm1, %v1934_v14, %v1936_v15  ;;  %v319_v29 = vmul.f32 %v3704_v21, %v3652_v10  ;;  %v396_v30 = vunpack.c.l.bf16 %v380_v7 }
  0x70   : > { %v2018_v31 = vadd.f32 %v1935_v27, %v1742_v8  ;;  %v2019_v32 = vadd.f32 %v1937_v28, %v1743_v22  ;;  %v2209_v33 = vrot.slane %v2095_v23, 2  ;;  %v2213_v34 = vsel %vm787_vm2, %v2210_v24, %v2212_v25  ;;  %v3324_v22 = vld [vmem:[%s3650_s25 + $0x30] sm:$0xff]   ;;  %v3014_v27 = vld [vmem:[%s3650_s25 + $0x38] sm:$0x1] }
  0x71   : > { %v420_v35 = vmul.f32 %v3702_v5, %v3654_v11  ;;  %v421_v36 = vmul.f32 %v3704_v21, %v3654_v11  ;;  %v422_v38 = vmul.f32 %v3654_v11, %v396_v30  ;;  %v673_v39 = vunpack.c.l.bf16 %v657_v26 }
  0x72   : > { %v2211_v40 = vsel %vm787_vm2, %v2209_v33, %v2210_v24  ;;  %v2295_v41 = vadd.f32 %v2213_v34, %v2019_v32  ;;  %v698_v42 = vmul.f32 %v3704_v21, %v3657_v12  ;;  %v699_v43 = vmul.f32 %v3657_v12, %v396_v30 }
  0x73   : > { %v2294_v45 = vadd.f32 %v2211_v40, %v2018_v31  ;;  %v521_v46 = vrot.slane %v420_v35, 1  ;;  %v522_v47 = vrot.slane %v421_v36, 1  ;;  %v524_v5 = vrot.slane %v422_v38, 1 }
  0x74   : > { %v2334_v48 = vadd.f32 %v3738_v60, %v2295_v41  ;;  %v697_v6 = vmul.f32 %v3657_v12, %v673_v39  ;;  %v799_v9 = vrot.slane %v698_v42, 2  ;;  %v801_v49 = vrot.slane %v699_v43, 2  ;;  %v3030_v41 = vld [vmem:[%s3650_s25 + $0x30] sm:$0xe] }
  0x75   : > { %v2333_v50 = vadd.f32 %v3738_v60, %v2294_v45  ;;  %v523_v51 = vsel %vm510_vm1, %v521_v46, %v522_v47  ;;  %v525_v21 = vsel %vm510_vm1, %v522_v47, %v524_v5  ;;  %v972_v52 = vunpack.c.l.bf16 %v2920_v44 }
  0x76   : > { %v2366_v54 = vmax.f32 %v2334_v48, 0.0  ;;  %v627_v55 = vadd.f32 %v523_v51, %v318_v16  ;;  %v628_v56 = vadd.f32 %v525_v21, %v319_v29  ;;  %v798_v58 = vrot.slane %v697_v6, 2 }
  0x77   : > { %v2365_v59 = vmax.f32 %v2333_v50, 0.0  ;;  %v802_v61 = vsel %vm787_vm2, %v799_v9, %v801_v49  ;;  %v973_v62 = vunpack.c.h.bf16 %v2920_v44  ;;  %v1008_v0 = vmul.f32 %v3659_v13, %v972_v52 }
  0x78   : > { %v800_v2 = vsel %vm787_vm2, %v798_v58, %v799_v9  ;;  %v905_v3 = vadd.f32 %v802_v61, %v628_v56  ;;  %v1086_v4 = vunpack.c.l.bf16 %v2950_v53  ;;  %v1110_v7 = vmul.f32 %v3664_v17, %v972_v52 }
  0x79   : > { %v2388_v8 = vpack.c.bf16 %v2366_v54, %v2365_v59  ;;  %v904_v14 = vadd.f32 %v800_v2, %v627_v55  ;;  %v1009_v15 = vmul.f32 %v3659_v13, %v973_v62  ;;  %v1111_v16 = vmul.f32 %v3664_v17, %v973_v62  ;;  %v388_v59 = vld [vmem:[%s3650_s25 + $0x80] sm:$0x1] }
  0x7a   : > { %v1112_v23 = vmul.f32 %v3664_v17, %v1086_v4  ;;  %v1210_v24 = vrot.slane %v1110_v7, 1  ;;  %v1362_v25 = vunpack.c.l.bf16 %v2966_v1  ;;  %v1387_v26 = vmul.f32 %v3667_v18, %v973_v62 }
  0x7b   : > { %3382 = vmatmul.mubr.msk.bf16.vlgmr.msra.gmra.mrb[0].mxu1 %vm2403_vm3, %v2388_v8  ;;  %v1040_v28 = vadd.f32 %v1008_v0, %v904_v14  ;;  %v1041_v29 = vadd.f32 %v1009_v15, %v905_v3  ;;  %v1211_v30 = vrot.slane %v1111_v16, 1  ;;  %v1388_v31 = vmul.f32 %v3667_v18, %v1086_v4  ;;  %v665_v8 = vld [vmem:[%s3650_s25 + $0x78] sm:$0xe] }
  0x7c   : > { %v1213_v32 = vrot.slane %v1112_v23, 1  ;;  %v1386_v33 = vmul.f32 %v3667_v18, %v1362_v25  ;;  %v1487_v34 = vrot.slane %v1387_v26, 2  ;;  %v3931_v35 = vunpack.c.l.bf16 %v3324_v22 }
  0x7d   : > { %v1212_v36 = vsel %vm510_vm1, %v1210_v24, %v1211_v30  ;;  %v1489_v38 = vrot.slane %v1388_v31, 2  ;;  %v3934_v39 = vunpack.c.h.bf16 %v3324_v22  ;;  %v1774_v40 = vunpack.c.l.bf16 %v3014_v27  ;;  %v2936_v31 = vld [vmem:[%s3650_s25 + $0x84] sm:$0xff]  }
  0x7e   : > { %v1214_v42 = vsel %vm510_vm1, %v1211_v30, %v1213_v32  ;;  %v1316_v43 = vadd.f32 %v1212_v36, %v1040_v28  ;;  %v1486_v44 = vrot.slane %v1386_v33, 2  ;;  %v1696_v45 = vmul.f32 %v3931_v35, %v3670_v19 }
  0x7f   : > { %v1317_v46 = vadd.f32 %v1214_v42, %v1041_v29  ;;  %v1490_v47 = vsel %vm787_vm2, %v1487_v34, %v1489_v38  ;;  %v1697_v5 = vmul.f32 %v3934_v39, %v3670_v19  ;;  %v1798_v48 = vmul.f32 %v3931_v35, %v3673_v20 }
  0x80   : > { %v1488_v6 = vsel %vm787_vm2, %v1486_v44, %v1487_v34  ;;  %v1799_v9 = vmul.f32 %v3934_v39, %v3673_v20  ;;  %v1800_v49 = vmul.f32 %v3673_v20, %v1774_v40  ;;  %v2050_v50 = vunpack.c.l.bf16 %v3030_v41 }
  0x81   : > { %v1592_v51 = vadd.f32 %v1488_v6, %v1316_v43  ;;  %v1593_v21 = vadd.f32 %v1490_v47, %v1317_v46  ;;  %v1898_v52 = vrot.slane %v1798_v48, 1  ;;  %v2075_v53 = vmul.f32 %v3934_v39, %v3721_v37  ;;  %v2958_v46 = vld [vmem:[%s3650_s25 + $0x8c] sm:$0x1] }
  0x82   : > { %v1899_v54 = vrot.slane %v1799_v9, 1  ;;  %v1901_v55 = vrot.slane %v1800_v49, 1  ;;  %v2074_v56 = vmul.f32 %v3721_v37, %v2050_v50  ;;  %v2076_v58 = vmul.f32 %v3721_v37, %v1774_v40 }
  0x83   : > { %v1728_v61 = vadd.f32 %v1696_v45, %v1592_v51  ;;  %v1729_v62 = vadd.f32 %v1697_v5, %v1593_v21  ;;  %v2175_v0 = vrot.slane %v2075_v53, 2  ;;  %v334_v1 = vmul.f32 %v3765_v57, %v3652_v10  ;;  %v2974_v51 = vld [vmem:[%s3650_s25 + $0x84] sm:$0xe] }
  0x84   : > { %v1900_v2 = vsel %vm510_vm1, %v1898_v52, %v1899_v54  ;;  %v1902_v3 = vsel %vm510_vm1, %v1899_v54, %v1901_v55  ;;  %v2174_v4 = vrot.slane %v2074_v56, 2  ;;  %v2177_v7 = vrot.slane %v2076_v58, 2 }
  0x85   : > { %v2004_v14 = vadd.f32 %v1900_v2, %v1728_v61  ;;  %v2005_v15 = vadd.f32 %v1902_v3, %v1729_v62  ;;  %v335_v16 = vmul.f32 %v3769_v63, %v3652_v10  ;;  %v404_v22 = vunpack.c.l.bf16 %v388_v59  ;;  %v3328_v61 = vld [vmem:[%s3650_s25 + $0x90] sm:$0xff]  }
  0x86   : > { %v2176_v23 = vsel %vm787_vm2, %v2174_v4, %v2175_v0  ;;  %v2178_v24 = vsel %vm787_vm2, %v2175_v0, %v2177_v7  ;;  %v444_v25 = vmul.f32 %v3765_v57, %v3654_v11  ;;  %v445_v26 = vmul.f32 %v3769_v63, %v3654_v11 }
  0x87   : > { %v2280_v27 = vadd.f32 %v2176_v23, %v2004_v14  ;;  %v2281_v28 = vadd.f32 %v2178_v24, %v2005_v15  ;;  %v446_v29 = vmul.f32 %v3654_v11, %v404_v22  ;;  %v681_v30 = vunpack.c.l.bf16 %v665_v8  ;;  %v3022_v23 = vld [vmem:[%s3650_s25 + $0x98] sm:$0x1] }
  0x88   : > { %v561_v32 = vrot.slane %v444_v25, 1  ;;  %v562_v33 = vrot.slane %v445_v26, 1  ;;  %v722_v34 = vmul.f32 %v3769_v63, %v3657_v12  ;;  %v723_v36 = vmul.f32 %v3657_v12, %v404_v22 }
  0x89   : > { %v2319_v38 = vadd.f32 %v3738_v60, %v2280_v27  ;;  %v2320_v57 = vadd.f32 %v3738_v60, %v2281_v28  ;;  %v564_v40 = vrot.slane %v446_v29, 1  ;;  %v721_v41 = vmul.f32 %v3657_v12, %v681_v30  ;;  %v3038_v28 = vld [vmem:[%s3650_s25 + $0x90] sm:$0xe] }
  0x8a   : > { %v563_v42 = vsel %vm510_vm1, %v561_v32, %v562_v33  ;;  %v839_v43 = vrot.slane %v722_v34, 2  ;;  %v841_v44 = vrot.slane %v723_v36, 2  ;;  %v988_v45 = vunpack.c.l.bf16 %v2936_v31 }
  0x8b   : > { %v2351_v47 = vmax.f32 %v2319_v38, 0.0  ;;  %v2352_v5 = vmax.f32 %v2320_v57, 0.0  ;;  %v565_v63 = vsel %vm510_vm1, %v562_v33, %v564_v40  ;;  %v643_v48 = vadd.f32 %v563_v42, %v334_v1 }
  0x8c   : > { %v644_v6 = vadd.f32 %v565_v63, %v335_v16  ;;  %v838_v9 = vrot.slane %v721_v41, 2  ;;  %v842_v49 = vsel %vm787_vm2, %v839_v43, %v841_v44  ;;  %v989_v50 = vunpack.c.h.bf16 %v2936_v31 }
  0x8d   : > { %v2381_v21 = vpack.c.bf16 %v2352_v5, %v2351_v47  ;;  %v1024_v52 = vmul.f32 %v3659_v13, %v988_v45  ;;  %v1094_v53 = vunpack.c.l.bf16 %v2958_v46  ;;  %v1134_v54 = vmul.f32 %v3664_v17, %v988_v45  ;;  %v252_v47 = vld [vmem:[%s3650_s25 + $0x24] sm:$0xff]  }
  0x8e   : > { %v840_v55 = vsel %vm787_vm2, %v838_v9, %v839_v43  ;;  %v921_v56 = vadd.f32 %v842_v49, %v644_v6  ;;  %v1025_v58 = vmul.f32 %v3659_v13, %v989_v50  ;;  %v1135_v59 = vmul.f32 %v3664_v17, %v989_v50  ;;  %v381_v9 = vld [vmem:[%s3650_s25 + $0x2c] sm:$0x1] }
  0x8f   : > { %3369 = vmatprep.mubr.msk.bf16.mxu0 %vm2403_vm3, %v2381_v21  ;;  %v920_v62 = vadd.f32 %v840_v55, %v643_v48  ;;  %v1136_v0 = vmul.f32 %v3664_v17, %v1094_v53  ;;  %v1250_v1 = vrot.slane %v1134_v54, 1  ;;  %v1370_v2 = vunpack.c.l.bf16 %v2974_v51 }
  0x90   : > { %v1057_v3 = vadd.f32 %v1025_v58, %v921_v56  ;;  %v1251_v4 = vrot.slane %v1135_v59, 1  ;;  %v1411_v7 = vmul.f32 %v3667_v18, %v989_v50  ;;  %v1412_v8 = vmul.f32 %v3667_v18, %v1094_v53 }
  0x91   : > { %v1056_v14 = vadd.f32 %v1024_v52, %v920_v62  ;;  %v1253_v15 = vrot.slane %v1136_v0, 1  ;;  %v1410_v16 = vmul.f32 %v3667_v18, %v1370_v2  ;;  %v3991_v22 = vunpack.c.l.bf16 %v3328_v61  ;;  %v658_v62 = vld [vmem:[%s3650_s25 + $0x24] sm:$0xe] }
  0x92   : > { %v1252_v24 = vsel %vm510_vm1, %v1250_v1, %v1251_v4  ;;  %v1527_v25 = vrot.slane %v1411_v7, 2  ;;  %v1529_v26 = vrot.slane %v1412_v8, 2  ;;  %v3995_v27 = vunpack.c.h.bf16 %v3328_v61 }
  0x93   : > { %v1254_v29 = vsel %vm510_vm1, %v1251_v4, %v1253_v15  ;;  %v1332_v30 = vadd.f32 %v1252_v24, %v1056_v14  ;;  %v1526_v31 = vrot.slane %v1410_v16, 2  ;;  %v1712_v32 = vmul.f32 %v3991_v22, %v3670_v19 }
  0x94   : > { %v1333_v33 = vadd.f32 %v1254_v29, %v1057_v3  ;;  %v1530_v34 = vsel %vm787_vm2, %v1527_v25, %v1529_v26  ;;  %v1713_v36 = vmul.f32 %v3995_v27, %v3670_v19  ;;  %v1782_v38 = vunpack.c.l.bf16 %v3022_v23 }
  0x95   : > { %v1528_v57 = vsel %vm787_vm2, %v1526_v31, %v1527_v25  ;;  %v1822_v40 = vmul.f32 %v3991_v22, %v3673_v20  ;;  %v1823_v41 = vmul.f32 %v3995_v27, %v3673_v20  ;;  %v2058_v42 = vunpack.c.l.bf16 %v3038_v28 }
  0x96   : > { %v1608_v43 = vadd.f32 %v1528_v57, %v1332_v30  ;;  %v1609_v44 = vadd.f32 %v1530_v34, %v1333_v33  ;;  %v1824_v45 = vmul.f32 %v3673_v20, %v1782_v38  ;;  %v2099_v46 = vmul.f32 %v3995_v27, %v3721_v37  ;;  %v2951_v34 = vld [vmem:[%s3650_s25 + $0x38] sm:$0x1] }
  0x97   : > { %v1938_v5 = vrot.slane %v1822_v40, 1  ;;  %v1939_v63 = vrot.slane %v1823_v41, 1  ;;  %v2098_v48 = vmul.f32 %v3721_v37, %v2058_v42  ;;  %v2100_v6 = vmul.f32 %v3721_v37, %v1782_v38 }
  0x98   : > { %v1744_v49 = vadd.f32 %v1712_v32, %v1608_v43  ;;  %v1745_v50 = vadd.f32 %v1713_v36, %v1609_v44  ;;  %v1941_v51 = vrot.slane %v1824_v45, 1  ;;  %v2215_v21 = vrot.slane %v2099_v46, 2  ;;  %v2967_v45 = vld [vmem:[%s3650_s25 + $0x30] sm:$0xe] }
  0x99   : > { %v1940_v52 = vsel %vm510_vm1, %v1938_v5, %v1939_v63  ;;  %v2214_v53 = vrot.slane %v2098_v48, 2  ;;  %v2217_v54 = vrot.slane %v2100_v6, 2  ;;  %v284_v55 = vunpack.c.l.bf16 %v252_v47 }
  0x9a   : > { %v1942_v56 = vsel %vm510_vm1, %v1939_v63, %v1941_v51  ;;  %v2020_v58 = vadd.f32 %v1940_v52, %v1744_v49  ;;  %v285_v59 = vunpack.c.h.bf16 %v252_v47  ;;  %v397_v61 = vunpack.c.l.bf16 %v381_v9  ;;  %v2986_v52 = vld [vmem:[%s3650_s25 + $0x3c] sm:$0xff]  }
  0x9b   : > { %v2021_v0 = vadd.f32 %v1942_v56, %v1745_v50  ;;  %v2216_v1 = vsel %vm787_vm2, %v2214_v53, %v2215_v21  ;;  %v2218_v2 = vsel %vm787_vm2, %v2215_v21, %v2217_v54  ;;  %v320_v3 = vmul.f32 %v3652_v10, %v284_v55 }
  0x9c   : > { %v2296_v4 = vadd.f32 %v2216_v1, %v2020_v58  ;;  %v321_v7 = vmul.f32 %v3652_v10, %v285_v59  ;;  %v423_v8 = vmul.f32 %v3654_v11, %v284_v55  ;;  %v424_v14 = vmul.f32 %v3654_v11, %v285_v59 }
  0x9d   : > { %v2297_v15 = vadd.f32 %v2218_v2, %v2021_v0  ;;  %v425_v16 = vmul.f32 %v3654_v11, %v397_v61  ;;  %v674_v23 = vunpack.c.l.bf16 %v658_v62  ;;  %v701_v24 = vmul.f32 %v3657_v12, %v285_v59  ;;  %v3015_v0 = vld [vmem:[%s3650_s25 + $0x44] sm:$0x1] }
  0x9e   : > { %v2335_v25 = vadd.f32 %v3738_v60, %v2296_v4  ;;  %v526_v26 = vrot.slane %v423_v8, 1  ;;  %v527_v28 = vrot.slane %v424_v14, 1  ;;  %v702_v29 = vmul.f32 %v3657_v12, %v397_v61 }
  0x9f   : > { %v2336_v30 = vadd.f32 %v3738_v60, %v2297_v15  ;;  %v529_v31 = vrot.slane %v425_v16, 1  ;;  %v700_v32 = vmul.f32 %v3657_v12, %v674_v23  ;;  %v804_v33 = vrot.slane %v701_v24, 2  ;;  %v3031_v16 = vld [vmem:[%s3650_s25 + $0x3c] sm:$0xe] }
  0xa0   : > { %v2367_v36 = vmax.f32 %v2335_v25, 0.0  ;;  %v528_v38 = vsel %vm510_vm1, %v526_v26, %v527_v28  ;;  %v806_v57 = vrot.slane %v702_v29, 2  ;;  %v1010_v40 = vmul.f32 %v3931_v35, %v3659_v13 }
  0xa1   : > { %v2368_v41 = vmax.f32 %v2336_v30, 0.0  ;;  %v530_v42 = vsel %vm510_vm1, %v527_v28, %v529_v31  ;;  %v629_v43 = vadd.f32 %v528_v38, %v320_v3  ;;  %v803_v44 = vrot.slane %v700_v32, 2  ;;  %v268_v38 = vld [vmem:[%s3650_s25 + $0x84] sm:$0xff]  }
  0xa2   : > { %v630_v60 = vadd.f32 %v530_v42, %v321_v7  ;;  %v807_v46 = vsel %vm787_vm2, %v804_v33, %v806_v57  ;;  %v1011_v47 = vmul.f32 %v3934_v39, %v3659_v13  ;;  %v1087_v5 = vunpack.c.l.bf16 %v2951_v34 }
  0xa3   : > { %v2389_v63 = vpack.c.bf16 %v2368_v41, %v2367_v36  ;;  %v805_v48 = vsel %vm787_vm2, %v803_v44, %v804_v33  ;;  %v1113_v6 = vmul.f32 %v3931_v35, %v3664_v17  ;;  %v1114_v9 = vmul.f32 %v3934_v39, %v3664_v17 }
  0xa4   : > { %v906_v49 = vadd.f32 %v805_v48, %v629_v43  ;;  %v907_v50 = vadd.f32 %v807_v46, %v630_v60  ;;  %v1115_v51 = vmul.f32 %v3664_v17, %v1087_v5  ;;  %v1363_v21 = vunpack.c.l.bf16 %v2967_v45  ;;  %v389_v46 = vld [vmem:[%s3650_s25 + $0x8c] sm:$0x1] }
  0xa5   : > { %3385 = vmatprep.mubr.msk.bf16.mxu1 %vm2403_vm3, %v2389_v63  ;;  %v1215_v53 = vrot.slane %v1113_v6, 1  ;;  %v1216_v54 = vrot.slane %v1114_v9, 1  ;;  %v1390_v55 = vmul.f32 %v3934_v39, %v3667_v18  ;;  %v1391_v56 = vmul.f32 %v3667_v18, %v1087_v5 }
  0xa6   : > { %v1042_v58 = vadd.f32 %v1010_v40, %v906_v49  ;;  %v1043_v59 = vadd.f32 %v1011_v47, %v907_v50  ;;  %v1218_v61 = vrot.slane %v1115_v51, 1  ;;  %v1389_v62 = vmul.f32 %v3667_v18, %v1363_v21  ;;  %v666_v51 = vld [vmem:[%s3650_s25 + $0x84] sm:$0xe] }
  0xa7   : > { %v1217_v1 = vsel %vm510_vm1, %v1215_v53, %v1216_v54  ;;  %v1492_v2 = vrot.slane %v1390_v55, 2  ;;  %v1494_v3 = vrot.slane %v1391_v56, 2  ;;  %v1662_v4 = vunpack.c.l.bf16 %v2986_v52 }
  0xa8   : > { %v1219_v7 = vsel %vm510_vm1, %v1216_v54, %v1218_v61  ;;  %v1318_v8 = vadd.f32 %v1217_v1, %v1042_v58  ;;  %v1491_v14 = vrot.slane %v1389_v62, 2  ;;  %v1663_v15 = vunpack.c.h.bf16 %v2986_v52 }
  0xa9   : > { %v1319_v23 = vadd.f32 %v1219_v7, %v1043_v59  ;;  %v1495_v24 = vsel %vm787_vm2, %v1492_v2, %v1494_v3  ;;  %v1698_v25 = vmul.f32 %v3670_v19, %v1662_v4  ;;  %v1775_v26 = vunpack.c.l.bf16 %v3015_v0 }
  0xaa   : > { %v1493_v28 = vsel %vm787_vm2, %v1491_v14, %v1492_v2  ;;  %v1699_v29 = vmul.f32 %v3670_v19, %v1663_v15  ;;  %v1801_v30 = vmul.f32 %v3673_v20, %v1662_v4  ;;  %v1802_v31 = vmul.f32 %v3673_v20, %v1663_v15 }
  0xab   : > { %v1594_v32 = vadd.f32 %v1493_v28, %v1318_v8  ;;  %v1595_v33 = vadd.f32 %v1495_v24, %v1319_v23  ;;  %v1803_v34 = vmul.f32 %v3673_v20, %v1775_v26  ;;  %v2051_v36 = vunpack.c.l.bf16 %v3031_v16  ;;  %v4083_v8 = vld [vmem:[%s4728_s2] ss:$0 sm:$0xff] }
  0xac   : > { %v1903_v57 = vrot.slane %v1801_v30, 1  ;;  %v1904_v40 = vrot.slane %v1802_v31, 1  ;;  %v2078_v41 = vmul.f32 %v3721_v37, %v1663_v15  ;;  %v2079_v42 = vmul.f32 %v3721_v37, %v1775_v26 }
  0xad   : > { %v1730_v43 = vadd.f32 %v1698_v25, %v1594_v32  ;;  %v1731_v44 = vadd.f32 %v1699_v29, %v1595_v33  ;;  %v1906_v45 = vrot.slane %v1803_v34, 1  ;;  %v2077_v60 = vmul.f32 %v3721_v37, %v2051_v36  ;;  %v2959_v29 = vld [vmem:[%s3650_s25 + $0x98] sm:$0x1]  ;;  %v2975_v34 = vld [vmem:[%s3650_s25 + $0x90] sm:$0xe] }
  0xae   : > { %v1905_v47 = vsel %vm510_vm1, %v1903_v57, %v1904_v40  ;;  %v2180_v5 = vrot.slane %v2078_v41, 2  ;;  %v2182_v63 = vrot.slane %v2079_v42, 2  ;;  %v300_v48 = vunpack.c.l.bf16 %v268_v38 }
  0xaf   : > { %v1907_v6 = vsel %vm510_vm1, %v1904_v40, %v1906_v45  ;;  %v2006_v9 = vadd.f32 %v1905_v47, %v1730_v43  ;;  %v2179_v49 = vrot.slane %v2077_v60, 2  ;;  %v301_v50 = vunpack.c.h.bf16 %v268_v38 }
  0xb0   : > { %v2007_v21 = vadd.f32 %v1907_v6, %v1731_v44  ;;  %v2183_v52 = vsel %vm787_vm2, %v2180_v5, %v2182_v63  ;;  %v336_v53 = vmul.f32 %v3652_v10, %v300_v48  ;;  %v405_v54 = vunpack.c.l.bf16 %v389_v46 }
  0xb1   : > { %v2181_v55 = vsel %vm787_vm2, %v2179_v49, %v2180_v5  ;;  %v337_v56 = vmul.f32 %v3652_v10, %v301_v50  ;;  %v447_v58 = vmul.f32 %v3654_v11, %v300_v48  ;;  %v448_v59 = vmul.f32 %v3654_v11, %v301_v50  ;;  %v3002_v5 = vld [vmem:[%s3650_s25 + $0x9c] sm:$0xff]   ;;  %v3023_v49 = vld [vmem:[%s3650_s25 + $0xa4] sm:$0x1] }
  0xb2   : > { %v2282_v61 = vadd.f32 %v2181_v55, %v2006_v9  ;;  %v2283_v62 = vadd.f32 %v2183_v52, %v2007_v21  ;;  %v449_v0 = vmul.f32 %v3654_v11, %v405_v54  ;;  %v682_v1 = vunpack.c.l.bf16 %v666_v51 }
  0xb3   : > { %v566_v2 = vrot.slane %v447_v58, 1  ;;  %v567_v3 = vrot.slane %v448_v59, 1  ;;  %v725_v4 = vmul.f32 %v3657_v12, %v301_v50  ;;  %v726_v7 = vmul.f32 %v3657_v12, %v405_v54 }
  0xb4   : > { %v2321_v14 = vadd.f32 %v4083_v8, %v2282_v61  ;;  %v2322_v15 = vadd.f32 %v4083_v8, %v2283_v62  ;;  %v569_v16 = vrot.slane %v449_v0, 1  ;;  %v724_v23 = vmul.f32 %v3657_v12, %v682_v1 }
  0xb5   : > { %v568_v24 = vsel %vm510_vm1, %v566_v2, %v567_v3  ;;  %v844_v25 = vrot.slane %v725_v4, 2  ;;  %v846_v26 = vrot.slane %v726_v7, 2  ;;  %v1026_v28 = vmul.f32 %v3991_v22, %v3659_v13  ;;  %v3039_v4 = vld [vmem:[%s3650_s25 + $0x9c] sm:$0xe] }
  0xb6   : > { %v2353_v30 = vmax.f32 %v2321_v14, 0.0  ;;  %v2354_v31 = vmax.f32 %v2322_v15, 0.0  ;;  %v570_v32 = vsel %vm510_vm1, %v567_v3, %v569_v16  ;;  %v645_v33 = vadd.f32 %v568_v24, %v336_v53 }
  0xb7   : > { %v646_v36 = vadd.f32 %v570_v32, %v337_v56  ;;  %v843_v38 = vrot.slane %v724_v23, 2  ;;  %v847_v57 = vsel %vm787_vm2, %v844_v25, %v846_v26  ;;  %v1027_v40 = vmul.f32 %v3995_v27, %v3659_v13  ;;  %v382_v32 = vld [vmem:[%s3650_s25 + $0x38] sm:$0x1] }
  0xb8   : > { %v2382_v41 = vpack.c.bf16 %v2354_v31, %v2353_v30  ;;  %v1095_v42 = vunpack.c.l.bf16 %v2959_v29  ;;  %v1137_v43 = vmul.f32 %v3991_v22, %v3664_v17  ;;  %v1138_v44 = vmul.f32 %v3995_v27, %v3664_v17 }
  0xb9   : > { %v845_v45 = vsel %vm787_vm2, %v843_v38, %v844_v25  ;;  %v923_v60 = vadd.f32 %v847_v57, %v646_v36  ;;  %v1371_v46 = vunpack.c.l.bf16 %v2975_v34  ;;  %v1414_v47 = vmul.f32 %v3995_v27, %v3667_v18 }
  0xba   : > { %3370 = vmatmul.mubr.msk.bf16.gmra.mrb[4].mxu0 %vm2403_vm3, %v2382_v41  ;;  %v922_v63 = vadd.f32 %v845_v45, %v645_v33  ;;  %v1139_v48 = vmul.f32 %v3664_v17, %v1095_v42  ;;  %v1255_v6 = vrot.slane %v1137_v43, 1  ;;  %v1256_v9 = vrot.slane %v1138_v44, 1  ;;  %v659_v43 = vld [vmem:[%s3650_s25 + $0x30] sm:$0xe] }
  0xbb   : > { %v1059_v50 = vadd.f32 %v1027_v40, %v923_v60  ;;  %v1413_v51 = vmul.f32 %v3667_v18, %v1371_v46  ;;  %v1415_v21 = vmul.f32 %v3667_v18, %v1095_v42  ;;  %v1532_v52 = vrot.slane %v1414_v47, 2 }
  0xbc   : > { %v1058_v53 = vadd.f32 %v1026_v28, %v922_v63  ;;  %v1257_v54 = vsel %vm510_vm1, %v1255_v6, %v1256_v9  ;;  %v1258_v55 = vrot.slane %v1139_v48, 1  ;;  %v1678_v56 = vunpack.c.l.bf16 %v3002_v5 }
  0xbd   : > { %v1531_v58 = vrot.slane %v1413_v51, 2  ;;  %v1534_v59 = vrot.slane %v1415_v21, 2  ;;  %v1679_v61 = vunpack.c.h.bf16 %v3002_v5  ;;  %v1783_v62 = vunpack.c.l.bf16 %v3023_v49 }
  0xbe   : > { %v1259_v0 = vsel %vm510_vm1, %v1256_v9, %v1258_v55  ;;  %v1334_v1 = vadd.f32 %v1257_v54, %v1058_v53  ;;  %v1714_v2 = vmul.f32 %v3670_v19, %v1678_v56  ;;  %v1825_v3 = vmul.f32 %v3673_v20, %v1678_v56  ;;  %v2924_v54 = vld [vmem:[%s3650_s25 + $0x3c] sm:$0xff]  }
  0xbf   : > { %v1335_v7 = vadd.f32 %v1259_v0, %v1059_v50  ;;  %v1533_v14 = vsel %vm787_vm2, %v1531_v58, %v1532_v52  ;;  %v1535_v15 = vsel %vm787_vm2, %v1532_v52, %v1534_v59  ;;  %v1715_v16 = vmul.f32 %v3670_v19, %v1679_v61 }
  0xc0   : > { %v1610_v23 = vadd.f32 %v1533_v14, %v1334_v1  ;;  %v1826_v24 = vmul.f32 %v3673_v20, %v1679_v61  ;;  %v1827_v25 = vmul.f32 %v3673_v20, %v1783_v62  ;;  %v1943_v26 = vrot.slane %v1825_v3, 1 }
  0xc1   : > { %v1611_v28 = vadd.f32 %v1535_v15, %v1335_v7  ;;  %v2059_v29 = vunpack.c.l.bf16 %v3039_v4  ;;  %v2102_v30 = vmul.f32 %v3721_v37, %v1679_v61  ;;  %v2103_v31 = vmul.f32 %v3721_v37, %v1783_v62  ;;  %v2952_v4 = vld [vmem:[%s3650_s25 + $0x44] sm:$0x1] }
  0xc2   : > { %v1746_v33 = vadd.f32 %v1714_v2, %v1610_v23  ;;  %v1944_v34 = vrot.slane %v1826_v24, 1  ;;  %v1946_v36 = vrot.slane %v1827_v25, 1  ;;  %v322_v38 = vmul.f32 %v3931_v35, %v3652_v10 }
  0xc3   : > { %v1747_v57 = vadd.f32 %v1715_v16, %v1611_v28  ;;  %v2101_v40 = vmul.f32 %v3721_v37, %v2059_v29  ;;  %v2220_v41 = vrot.slane %v2102_v30, 2  ;;  %v2222_v42 = vrot.slane %v2103_v31, 2  ;;  %v2968_v28 = vld [vmem:[%s3650_s25 + $0x3c] sm:$0xe] }
  0xc4   : > { %v1945_v44 = vsel %vm510_vm1, %v1943_v26, %v1944_v34  ;;  %v1947_v45 = vsel %vm510_vm1, %v1944_v34, %v1946_v36  ;;  %v323_v60 = vmul.f32 %v3934_v39, %v3652_v10  ;;  %v398_v46 = vunpack.c.l.bf16 %v382_v32 }
  0xc5   : > { %v2022_v47 = vadd.f32 %v1945_v44, %v1746_v33  ;;  %v2023_v5 = vadd.f32 %v1947_v45, %v1747_v57  ;;  %v2219_v63 = vrot.slane %v2101_v40, 2  ;;  %v2223_v48 = vsel %vm787_vm2, %v2220_v41, %v2222_v42  ;;  %v3325_v57 = vld [vmem:[%s3650_s25 + $0x48] sm:$0xff]   ;;  %v3016_v44 = vld [vmem:[%s3650_s25 + $0x50] sm:$0x1] }
  0xc6   : > { %v426_v6 = vmul.f32 %v3931_v35, %v3654_v11  ;;  %v427_v9 = vmul.f32 %v3934_v39, %v3654_v11  ;;  %v428_v49 = vmul.f32 %v3654_v11, %v398_v46  ;;  %v675_v50 = vunpack.c.l.bf16 %v659_v43 }
  0xc7   : > { %v2221_v51 = vsel %vm787_vm2, %v2219_v63, %v2220_v41  ;;  %v2299_v21 = vadd.f32 %v2223_v48, %v2023_v5  ;;  %v704_v52 = vmul.f32 %v3934_v39, %v3657_v12  ;;  %v705_v53 = vmul.f32 %v3657_v12, %v398_v46 }
  0xc8   : > { %v2298_v55 = vadd.f32 %v2221_v51, %v2022_v47  ;;  %v531_v56 = vrot.slane %v426_v6, 1  ;;  %v532_v58 = vrot.slane %v427_v9, 1  ;;  %v534_v35 = vrot.slane %v428_v49, 1 }
  0xc9   : > { %v2338_v59 = vadd.f32 %v4083_v8, %v2299_v21  ;;  %v703_v61 = vmul.f32 %v3657_v12, %v675_v50  ;;  %v809_v62 = vrot.slane %v704_v52, 2  ;;  %v811_v0 = vrot.slane %v705_v53, 2  ;;  %v3032_v21 = vld [vmem:[%s3650_s25 + $0x48] sm:$0xe] }
  0xca   : > { %v2337_v1 = vadd.f32 %v4083_v8, %v2298_v55  ;;  %v533_v2 = vsel %vm510_vm1, %v531_v56, %v532_v58  ;;  %v535_v39 = vsel %vm510_vm1, %v532_v58, %v534_v35  ;;  %v976_v3 = vunpack.c.l.bf16 %v2924_v54 }
  0xcb   : > { %v2370_v7 = vmax.f32 %v2338_v59, 0.0  ;;  %v631_v14 = vadd.f32 %v533_v2, %v322_v38  ;;  %v632_v15 = vadd.f32 %v535_v39, %v323_v60  ;;  %v808_v16 = vrot.slane %v703_v61, 2 }
  0xcc   : > { %v2369_v23 = vmax.f32 %v2337_v1, 0.0  ;;  %v812_v24 = vsel %vm787_vm2, %v809_v62, %v811_v0  ;;  %v977_v25 = vunpack.c.h.bf16 %v2924_v54  ;;  %v1012_v26 = vmul.f32 %v3659_v13, %v976_v3 }
  0xcd   : > { %v810_v29 = vsel %vm787_vm2, %v808_v16, %v809_v62  ;;  %v909_v30 = vadd.f32 %v812_v24, %v632_v15  ;;  %v1088_v31 = vunpack.c.l.bf16 %v2952_v4  ;;  %v1116_v32 = vmul.f32 %v3664_v17, %v976_v3 }
  0xce   : > { %v2390_v33 = vpack.c.bf16 %v2370_v7, %v2369_v23  ;;  %v908_v34 = vadd.f32 %v810_v29, %v631_v14  ;;  %v1013_v36 = vmul.f32 %v3659_v13, %v977_v25  ;;  %v1117_v38 = vmul.f32 %v3664_v17, %v977_v25  ;;  %v390_v23 = vld [vmem:[%s3650_s25 + $0x98] sm:$0x1] }
  0xcf   : > { %v1118_v40 = vmul.f32 %v3664_v17, %v1088_v31  ;;  %v1220_v41 = vrot.slane %v1116_v32, 1  ;;  %v1364_v42 = vunpack.c.l.bf16 %v2968_v28  ;;  %v1393_v43 = vmul.f32 %v3667_v18, %v977_v25 }
  0xd0   : > { %3386 = vmatmul.mubr.msk.bf16.gmra.mrb[4].mxu1 %vm2403_vm3, %v2390_v33  ;;  %v1044_v45 = vadd.f32 %v1012_v26, %v908_v34  ;;  %v1045_v60 = vadd.f32 %v1013_v36, %v909_v30  ;;  %v1221_v46 = vrot.slane %v1117_v38, 1  ;;  %v1394_v47 = vmul.f32 %v3667_v18, %v1088_v31  ;;  %v667_v33 = vld [vmem:[%s3650_s25 + $0x90] sm:$0xe] }
  0xd1   : > { %v1223_v5 = vrot.slane %v1118_v40, 1  ;;  %v1392_v63 = vmul.f32 %v3667_v18, %v1364_v42  ;;  %v1497_v48 = vrot.slane %v1393_v43, 2  ;;  %v4162_v6 = vunpack.c.l.bf16 %v3325_v57 }
  0xd2   : > { %v1222_v9 = vsel %vm510_vm1, %v1220_v41, %v1221_v46  ;;  %v1499_v49 = vrot.slane %v1394_v47, 2  ;;  %v4165_v50 = vunpack.c.h.bf16 %v3325_v57  ;;  %v1776_v51 = vunpack.c.l.bf16 %v3016_v44  ;;  %v2940_v47 = vld [vmem:[%s3650_s25 + $0x9c] sm:$0xff]  }
  0xd3   : > { %v1224_v52 = vsel %vm510_vm1, %v1221_v46, %v1223_v5  ;;  %v1320_v53 = vadd.f32 %v1222_v9, %v1044_v45  ;;  %v1496_v54 = vrot.slane %v1392_v63, 2  ;;  %v1700_v55 = vmul.f32 %v4162_v6, %v3670_v19 }
  0xd4   : > { %v1321_v56 = vadd.f32 %v1224_v52, %v1045_v60  ;;  %v1500_v58 = vsel %vm787_vm2, %v1497_v48, %v1499_v49  ;;  %v1701_v35 = vmul.f32 %v4165_v50, %v3670_v19  ;;  %v1804_v59 = vmul.f32 %v4162_v6, %v3673_v20 }
  0xd5   : > { %v1498_v61 = vsel %vm787_vm2, %v1496_v54, %v1497_v48  ;;  %v1805_v62 = vmul.f32 %v4165_v50, %v3673_v20  ;;  %v1806_v0 = vmul.f32 %v3673_v20, %v1776_v51  ;;  %v2052_v1 = vunpack.c.l.bf16 %v3032_v21 }
  0xd6   : > { %v1596_v2 = vadd.f32 %v1498_v61, %v1320_v53  ;;  %v1597_v39 = vadd.f32 %v1500_v58, %v1321_v56  ;;  %v1908_v3 = vrot.slane %v1804_v59, 1  ;;  %v2081_v4 = vmul.f32 %v4165_v50, %v3721_v37  ;;  %v2960_v56 = vld [vmem:[%s3650_s25 + $0xa4] sm:$0x1] }
  0xd7   : > { %v1909_v7 = vrot.slane %v1805_v62, 1  ;;  %v1911_v14 = vrot.slane %v1806_v0, 1  ;;  %v2080_v15 = vmul.f32 %v3721_v37, %v2052_v1  ;;  %v2082_v16 = vmul.f32 %v3721_v37, %v1776_v51 }
  0xd8   : > { %v1732_v24 = vadd.f32 %v1700_v55, %v1596_v2  ;;  %v1733_v25 = vadd.f32 %v1701_v35, %v1597_v39  ;;  %v2185_v26 = vrot.slane %v2081_v4, 2  ;;  %v338_v28 = vmul.f32 %v3991_v22, %v3652_v10  ;;  %v2976_v2 = vld [vmem:[%s3650_s25 + $0x9c] sm:$0xe] }
  0xd9   : > { %v1910_v29 = vsel %vm510_vm1, %v1908_v3, %v1909_v7  ;;  %v1912_v30 = vsel %vm510_vm1, %v1909_v7, %v1911_v14  ;;  %v2184_v31 = vrot.slane %v2080_v15, 2  ;;  %v2187_v32 = vrot.slane %v2082_v16, 2 }
  0xda   : > { %v2008_v34 = vadd.f32 %v1910_v29, %v1732_v24  ;;  %v2009_v36 = vadd.f32 %v1912_v30, %v1733_v25  ;;  %v339_v38 = vmul.f32 %v3995_v27, %v3652_v10  ;;  %v406_v57 = vunpack.c.l.bf16 %v390_v23  ;;  %v3329_v24 = vld [vmem:[%s3650_s25 + $0xa8] sm:$0xff]  }
  0xdb   : > { %v2186_v40 = vsel %vm787_vm2, %v2184_v31, %v2185_v26  ;;  %v2188_v41 = vsel %vm787_vm2, %v2185_v26, %v2187_v32  ;;  %v450_v42 = vmul.f32 %v3991_v22, %v3654_v11  ;;  %v451_v43 = vmul.f32 %v3995_v27, %v3654_v11 }
  0xdc   : > { %v2284_v44 = vadd.f32 %v2186_v40, %v2008_v34  ;;  %v2285_v45 = vadd.f32 %v2188_v41, %v2009_v36  ;;  %v452_v60 = vmul.f32 %v3654_v11, %v406_v57  ;;  %v683_v46 = vunpack.c.l.bf16 %v667_v33  ;;  %v3024_v40 = vld [vmem:[%s3650_s25 + $0xb0] sm:$0x1] }
  0xdd   : > { %v571_v5 = vrot.slane %v450_v42, 1  ;;  %v572_v63 = vrot.slane %v451_v43, 1  ;;  %v728_v48 = vmul.f32 %v3995_v27, %v3657_v12  ;;  %v729_v9 = vmul.f32 %v3657_v12, %v406_v57 }
  0xde   : > { %v2323_v49 = vadd.f32 %v4083_v8, %v2284_v44  ;;  %v2324_v22 = vadd.f32 %v4083_v8, %v2285_v45  ;;  %v574_v51 = vrot.slane %v452_v60, 1  ;;  %v727_v21 = vmul.f32 %v3657_v12, %v683_v46  ;;  %v3040_v45 = vld [vmem:[%s3650_s25 + $0xa8] sm:$0xe] }
  0xdf   : > { %v573_v52 = vsel %vm510_vm1, %v571_v5, %v572_v63  ;;  %v849_v53 = vrot.slane %v728_v48, 2  ;;  %v851_v54 = vrot.slane %v729_v9, 2  ;;  %v992_v55 = vunpack.c.l.bf16 %v2940_v47 }
  0xe0   : > { %v2355_v58 = vmax.f32 %v2323_v49, 0.0  ;;  %v2356_v35 = vmax.f32 %v2324_v22, 0.0  ;;  %v575_v27 = vsel %vm510_vm1, %v572_v63, %v574_v51  ;;  %v647_v59 = vadd.f32 %v573_v52, %v338_v28 }
  0xe1   : > { %v648_v61 = vadd.f32 %v575_v27, %v339_v38  ;;  %v848_v62 = vrot.slane %v727_v21, 2  ;;  %v852_v0 = vsel %vm787_vm2, %v849_v53, %v851_v54  ;;  %v993_v1 = vunpack.c.h.bf16 %v2940_v47 }
  0xe2   : > { %v2383_v39 = vpack.c.bf16 %v2356_v35, %v2355_v58  ;;  %v1028_v3 = vmul.f32 %v3659_v13, %v992_v55  ;;  %v1096_v4 = vunpack.c.l.bf16 %v2960_v56  ;;  %v1140_v7 = vmul.f32 %v3664_v17, %v992_v55  ;;  %v256_v58 = vld [vmem:[%s3650_s25 + $0x3c] sm:$0xff]  }
  0xe3   : > { %v850_v14 = vsel %vm787_vm2, %v848_v62, %v849_v53  ;;  %v925_v15 = vadd.f32 %v852_v0, %v648_v61  ;;  %v1029_v16 = vmul.f32 %v3659_v13, %v993_v1  ;;  %v1141_v23 = vmul.f32 %v3664_v17, %v993_v1  ;;  %v383_v62 = vld [vmem:[%s3650_s25 + $0x44] sm:$0x1] }
  0xe4   : > { %3373 = vmatprep.mubr.msk.bf16.mxu0 %vm2403_vm3, %v2383_v39  ;;  %v924_v25 = vadd.f32 %v850_v14, %v647_v59  ;;  %v1142_v26 = vmul.f32 %v3664_v17, %v1096_v4  ;;  %v1260_v28 = vrot.slane %v1140_v7, 1  ;;  %v1372_v29 = vunpack.c.l.bf16 %v2976_v2 }
  0xe5   : > { %v1061_v30 = vadd.f32 %v1029_v16, %v925_v15  ;;  %v1261_v31 = vrot.slane %v1141_v23, 1  ;;  %v1417_v32 = vmul.f32 %v3667_v18, %v993_v1  ;;  %v1418_v33 = vmul.f32 %v3667_v18, %v1096_v4 }
  0xe6   : > { %v1060_v34 = vadd.f32 %v1028_v3, %v924_v25  ;;  %v1263_v36 = vrot.slane %v1142_v26, 1  ;;  %v1416_v38 = vmul.f32 %v3667_v18, %v1372_v29  ;;  %v4222_v57 = vunpack.c.l.bf16 %v3329_v24  ;;  %v660_v25 = vld [vmem:[%s3650_s25 + $0x3c] sm:$0xe] }
  0xe7   : > { %v1262_v41 = vsel %vm510_vm1, %v1260_v28, %v1261_v31  ;;  %v1537_v42 = vrot.slane %v1417_v32, 2  ;;  %v1539_v43 = vrot.slane %v1418_v33, 2  ;;  %v4226_v44 = vunpack.c.h.bf16 %v3329_v24 }
  0xe8   : > { %v1264_v60 = vsel %vm510_vm1, %v1261_v31, %v1263_v36  ;;  %v1336_v46 = vadd.f32 %v1262_v41, %v1060_v34  ;;  %v1536_v47 = vrot.slane %v1416_v38, 2  ;;  %v1716_v5 = vmul.f32 %v4222_v57, %v3670_v19 }
  0xe9   : > { %v1337_v63 = vadd.f32 %v1264_v60, %v1061_v30  ;;  %v1540_v48 = vsel %vm787_vm2, %v1537_v42, %v1539_v43  ;;  %v1717_v9 = vmul.f32 %v4226_v44, %v3670_v19  ;;  %v1784_v49 = vunpack.c.l.bf16 %v3024_v40 }
  0xea   : > { %v1538_v22 = vsel %vm787_vm2, %v1536_v47, %v1537_v42  ;;  %v1828_v51 = vmul.f32 %v4222_v57, %v3673_v20  ;;  %v1829_v21 = vmul.f32 %v4226_v44, %v3673_v20  ;;  %v2060_v52 = vunpack.c.l.bf16 %v3040_v45 }
  0xeb   : > { %v1612_v53 = vadd.f32 %v1538_v22, %v1336_v46  ;;  %v1613_v54 = vadd.f32 %v1540_v48, %v1337_v63  ;;  %v1830_v55 = vmul.f32 %v3673_v20, %v1784_v49  ;;  %v2105_v56 = vmul.f32 %v4226_v44, %v3721_v37  ;;  %v2953_v48 = vld [vmem:[%s3650_s25 + $0x50] sm:$0x1] }
  0xec   : > { %v1948_v35 = vrot.slane %v1828_v51, 1  ;;  %v1949_v27 = vrot.slane %v1829_v21, 1  ;;  %v2104_v59 = vmul.f32 %v3721_v37, %v2060_v52  ;;  %v2106_v61 = vmul.f32 %v3721_v37, %v1784_v49 }
  0xed   : > { %v1748_v0 = vadd.f32 %v1716_v5, %v1612_v53  ;;  %v1749_v1 = vadd.f32 %v1717_v9, %v1613_v54  ;;  %v1951_v2 = vrot.slane %v1830_v55, 1  ;;  %v2225_v39 = vrot.slane %v2105_v56, 2  ;;  %v2969_v55 = vld [vmem:[%s3650_s25 + $0x48] sm:$0xe] }
  0xee   : > { %v1950_v3 = vsel %vm510_vm1, %v1948_v35, %v1949_v27  ;;  %v2224_v4 = vrot.slane %v2104_v59, 2  ;;  %v2227_v7 = vrot.slane %v2106_v61, 2  ;;  %v288_v14 = vunpack.c.l.bf16 %v256_v58 }
  0xef   : > { %v1952_v15 = vsel %vm510_vm1, %v1949_v27, %v1951_v2  ;;  %v2024_v16 = vadd.f32 %v1950_v3, %v1748_v0  ;;  %v289_v23 = vunpack.c.h.bf16 %v256_v58  ;;  %v399_v24 = vunpack.c.l.bf16 %v383_v62 }
  0xf0   : > { %v2025_v26 = vadd.f32 %v1952_v15, %v1749_v1  ;;  %v2226_v28 = vsel %vm787_vm2, %v2224_v4, %v2225_v39  ;;  %v2228_v29 = vsel %vm787_vm2, %v2225_v39, %v2227_v7  ;;  %v324_v30 = vmul.f32 %v3652_v10, %v288_v14  ;;  %v2990_v4 = vld [vmem:[%s3650_s25 + $0x54] sm:$0xff]  }
  0xf1   : > { %v2300_v31 = vadd.f32 %v2226_v28, %v2024_v16  ;;  %v325_v32 = vmul.f32 %v3652_v10, %v289_v23  ;;  %v429_v33 = vmul.f32 %v3654_v11, %v288_v14  ;;  %v430_v34 = vmul.f32 %v3654_v11, %v289_v23  ;;  %v3017_v28 = vld [vmem:[%s3650_s25 + $0x5c] sm:$0x1] }
  0xf2   : > { %v2301_v36 = vadd.f32 %v2228_v29, %v2025_v26  ;;  %v431_v38 = vmul.f32 %v3654_v11, %v399_v24  ;;  %v676_v40 = vunpack.c.l.bf16 %v660_v25  ;;  %v707_v41 = vmul.f32 %v3657_v12, %v289_v23 }
  0xf3   : > { %v2339_v42 = vadd.f32 %v4083_v8, %v2300_v31  ;;  %v536_v43 = vrot.slane %v429_v33, 1  ;;  %v537_v45 = vrot.slane %v430_v34, 1  ;;  %v708_v60 = vmul.f32 %v3657_v12, %v399_v24 }
  0xf4   : > { %v2340_v46 = vadd.f32 %v4083_v8, %v2301_v36  ;;  %v539_v47 = vrot.slane %v431_v38, 1  ;;  %v706_v5 = vmul.f32 %v3657_v12, %v676_v40  ;;  %v814_v63 = vrot.slane %v707_v41, 2  ;;  %v3033_v40 = vld [vmem:[%s3650_s25 + $0x54] sm:$0xe] }
  0xf5   : > { %v2371_v9 = vmax.f32 %v2339_v42, 0.0  ;;  %v538_v49 = vsel %vm510_vm1, %v536_v43, %v537_v45  ;;  %v816_v22 = vrot.slane %v708_v60, 2  ;;  %v1014_v51 = vmul.f32 %v4162_v6, %v3659_v13 }
  0xf6   : > { %v2372_v21 = vmax.f32 %v2340_v46, 0.0  ;;  %v540_v52 = vsel %vm510_vm1, %v537_v45, %v539_v47  ;;  %v633_v53 = vadd.f32 %v538_v49, %v324_v30  ;;  %v813_v54 = vrot.slane %v706_v5, 2 }
  0xf7   : > { %v634_v56 = vadd.f32 %v540_v52, %v325_v32  ;;  %v817_v58 = vsel %vm787_vm2, %v814_v63, %v816_v22  ;;  %v1015_v35 = vmul.f32 %v4165_v50, %v3659_v13  ;;  %v1089_v27 = vunpack.c.l.bf16 %v2953_v48  ;;  %v272_v22 = vld [vmem:[%s3650_s25 + $0x9c] sm:$0xff]  }
  0xf8   : > { %v2391_v59 = vpack.c.bf16 %v2372_v21, %v2371_v9  ;;  %v815_v61 = vsel %vm787_vm2, %v813_v54, %v814_v63  ;;  %v1119_v62 = vmul.f32 %v4162_v6, %v3664_v17  ;;  %v1120_v0 = vmul.f32 %v4165_v50, %v3664_v17 }
  0xf9   : > { %v910_v1 = vadd.f32 %v815_v61, %v633_v53  ;;  %v911_v2 = vadd.f32 %v817_v58, %v634_v56  ;;  %v1121_v39 = vmul.f32 %v3664_v17, %v1089_v27  ;;  %v1365_v3 = vunpack.c.l.bf16 %v2969_v55 }
  0xfa   : > { %3389 = vmatprep.mubr.msk.bf16.mxu1 %vm2403_vm3, %v2391_v59  ;;  %v1225_v7 = vrot.slane %v1119_v62, 1  ;;  %v1226_v14 = vrot.slane %v1120_v0, 1  ;;  %v1396_v15 = vmul.f32 %v4165_v50, %v3667_v18  ;;  %v1397_v16 = vmul.f32 %v3667_v18, %v1089_v27 }
  0xfb   : > { %v1046_v23 = vadd.f32 %v1014_v51, %v910_v1  ;;  %v1047_v24 = vadd.f32 %v1015_v35, %v911_v2  ;;  %v1228_v25 = vrot.slane %v1121_v39, 1  ;;  %v1395_v26 = vmul.f32 %v3667_v18, %v1365_v3  ;;  %v391_v35 = vld [vmem:[%s3650_s25 + $0xa4] sm:$0x1]  ;;  %v668_v3 = vld [vmem:[%s3650_s25 + $0x9c] sm:$0xe] }
  0xfc   : > { %v1227_v29 = vsel %vm510_vm1, %v1225_v7, %v1226_v14  ;;  %v1502_v30 = vrot.slane %v1396_v15, 2  ;;  %v1504_v31 = vrot.slane %v1397_v16, 2  ;;  %v1666_v32 = vunpack.c.l.bf16 %v2990_v4 }
  0xfd   : > { %v1229_v33 = vsel %vm510_vm1, %v1226_v14, %v1228_v25  ;;  %v1322_v34 = vadd.f32 %v1227_v29, %v1046_v23  ;;  %v1501_v36 = vrot.slane %v1395_v26, 2  ;;  %v1667_v38 = vunpack.c.h.bf16 %v2990_v4 }
  0xfe   : > { %v1323_v41 = vadd.f32 %v1229_v33, %v1047_v24  ;;  %v1505_v42 = vsel %vm787_vm2, %v1502_v30, %v1504_v31  ;;  %v1702_v43 = vmul.f32 %v3670_v19, %v1666_v32  ;;  %v1777_v45 = vunpack.c.l.bf16 %v3017_v28 }
  0xff   : > { %v1503_v60 = vsel %vm787_vm2, %v1501_v36, %v1502_v30  ;;  %v1703_v46 = vmul.f32 %v3670_v19, %v1667_v38  ;;  %v1807_v47 = vmul.f32 %v3673_v20, %v1666_v32  ;;  %v1808_v5 = vmul.f32 %v3673_v20, %v1667_v38 }
 0x100   : > { %v1598_v63 = vadd.f32 %v1503_v60, %v1322_v34  ;;  %v1599_v48 = vadd.f32 %v1505_v42, %v1323_v41  ;;  %v1809_v9 = vmul.f32 %v3673_v20, %v1777_v45  ;;  %v2053_v49 = vunpack.c.l.bf16 %v3033_v40 }
 0x101   : > { %v1913_v51 = vrot.slane %v1807_v47, 1  ;;  %v1914_v21 = vrot.slane %v1808_v5, 1  ;;  %v2084_v52 = vmul.f32 %v3721_v37, %v1667_v38  ;;  %v2085_v53 = vmul.f32 %v3721_v37, %v1777_v45 }
 0x102   : > { %v1734_v54 = vadd.f32 %v1702_v43, %v1598_v63  ;;  %v1735_v55 = vadd.f32 %v1703_v46, %v1599_v48  ;;  %v1916_v56 = vrot.slane %v1809_v9, 1  ;;  %v2083_v58 = vmul.f32 %v3721_v37, %v2053_v49  ;;  %v2961_v46 = vld [vmem:[%s3650_s25 + $0xb0] sm:$0x1]  ;;  %v2977_v9 = vld [vmem:[%s3650_s25 + $0xa8] sm:$0xe] }
 0x103   : > { %v1915_v27 = vsel %vm510_vm1, %v1913_v51, %v1914_v21  ;;  %v2190_v59 = vrot.slane %v2084_v52, 2  ;;  %v2192_v61 = vrot.slane %v2085_v53, 2  ;;  %v304_v62 = vunpack.c.l.bf16 %v272_v22 }
 0x104   : > { %v1917_v0 = vsel %vm510_vm1, %v1914_v21, %v1916_v56  ;;  %v2010_v1 = vadd.f32 %v1915_v27, %v1734_v54  ;;  %v2189_v2 = vrot.slane %v2083_v58, 2  ;;  %v305_v39 = vunpack.c.h.bf16 %v272_v22 }
 0x105   : > { %v2011_v4 = vadd.f32 %v1917_v0, %v1735_v55  ;;  %v2193_v7 = vsel %vm787_vm2, %v2190_v59, %v2192_v61  ;;  %v340_v14 = vmul.f32 %v3652_v10, %v304_v62  ;;  %v407_v15 = vunpack.c.l.bf16 %v391_v35 }
 0x106   : > { %v2191_v16 = vsel %vm787_vm2, %v2189_v2, %v2190_v59  ;;  %v341_v23 = vmul.f32 %v3652_v10, %v305_v39  ;;  %v453_v24 = vmul.f32 %v3654_v11, %v304_v62  ;;  %v454_v25 = vmul.f32 %v3654_v11, %v305_v39  ;;  %v3006_v59 = vld [vmem:[%s3650_s25 + $0xb4] sm:$0xff]   ;;  %v3025_v2 = vld [vmem:[%s3650_s25 + $0xbc] sm:$0x1] }
 0x107   : > { %v2286_v26 = vadd.f32 %v2191_v16, %v2010_v1  ;;  %v2287_v28 = vadd.f32 %v2193_v7, %v2011_v4  ;;  %v455_v29 = vmul.f32 %v3654_v11, %v407_v15  ;;  %v684_v30 = vunpack.c.l.bf16 %v668_v3 }
 0x108   : > { %v576_v31 = vrot.slane %v453_v24, 1  ;;  %v577_v32 = vrot.slane %v454_v25, 1  ;;  %v731_v33 = vmul.f32 %v3657_v12, %v305_v39  ;;  %v732_v34 = vmul.f32 %v3657_v12, %v407_v15 }
 0x109   : > { %v2325_v36 = vadd.f32 %v4083_v8, %v2286_v26  ;;  %v2326_v38 = vadd.f32 %v4083_v8, %v2287_v28  ;;  %v579_v40 = vrot.slane %v455_v29, 1  ;;  %v730_v41 = vmul.f32 %v3657_v12, %v684_v30 }
 0x10a   : > { %v578_v42 = vsel %vm510_vm1, %v576_v31, %v577_v32  ;;  %v854_v43 = vrot.slane %v731_v33, 2  ;;  %v856_v45 = vrot.slane %v732_v34, 2  ;;  %v1030_v60 = vmul.f32 %v4222_v57, %v3659_v13  ;;  %v3041_v33 = vld [vmem:[%s3650_s25 + $0xb4] sm:$0xe] }
 0x10b   : > { %v2357_v47 = vmax.f32 %v2325_v36, 0.0  ;;  %v2358_v5 = vmax.f32 %v2326_v38, 0.0  ;;  %v580_v63 = vsel %vm510_vm1, %v577_v32, %v579_v40  ;;  %v649_v48 = vadd.f32 %v578_v42, %v340_v14 }
 0x10c   : > { %v650_v49 = vadd.f32 %v580_v63, %v341_v23  ;;  %v853_v22 = vrot.slane %v730_v41, 2  ;;  %v857_v51 = vsel %vm787_vm2, %v854_v43, %v856_v45  ;;  %v1031_v21 = vmul.f32 %v4226_v44, %v3659_v13  ;;  %v384_v63 = vld [vmem:[%s3650_s25 + $0x50] sm:$0x1] }
 0x10d   : > { %v2384_v52 = vpack.c.bf16 %v2358_v5, %v2357_v47  ;;  %v1097_v53 = vunpack.c.l.bf16 %v2961_v46  ;;  %v1143_v54 = vmul.f32 %v4222_v57, %v3664_v17  ;;  %v1144_v55 = vmul.f32 %v4226_v44, %v3664_v17 }
 0x10e   : > { %v855_v56 = vsel %vm787_vm2, %v853_v22, %v854_v43  ;;  %v927_v58 = vadd.f32 %v857_v51, %v650_v49  ;;  %v1373_v35 = vunpack.c.l.bf16 %v2977_v9  ;;  %v1420_v27 = vmul.f32 %v4226_v44, %v3667_v18 }
 0x10f   : > { %3374 = vmatmul.mubr.msk.bf16.gmra.mrb[8].mxu0 %vm2403_vm3, %v2384_v52  ;;  %v926_v61 = vadd.f32 %v855_v56, %v649_v48  ;;  %v1145_v62 = vmul.f32 %v3664_v17, %v1097_v53  ;;  %v1265_v0 = vrot.slane %v1143_v54, 1  ;;  %v1266_v1 = vrot.slane %v1144_v55, 1  ;;  %v661_v54 = vld [vmem:[%s3650_s25 + $0x48] sm:$0xe] }
 0x110   : > { %v1063_v39 = vadd.f32 %v1031_v21, %v927_v58  ;;  %v1419_v3 = vmul.f32 %v3667_v18, %v1373_v35  ;;  %v1421_v4 = vmul.f32 %v3667_v18, %v1097_v53  ;;  %v1542_v7 = vrot.slane %v1420_v27, 2 }
 0x111   : > { %v1062_v14 = vadd.f32 %v1030_v60, %v926_v61  ;;  %v1267_v15 = vsel %vm510_vm1, %v1265_v0, %v1266_v1  ;;  %v1268_v16 = vrot.slane %v1145_v62, 1  ;;  %v1682_v23 = vunpack.c.l.bf16 %v3006_v59 }
 0x112   : > { %v1541_v24 = vrot.slane %v1419_v3, 2  ;;  %v1544_v25 = vrot.slane %v1421_v4, 2  ;;  %v1683_v26 = vunpack.c.h.bf16 %v3006_v59  ;;  %v1785_v28 = vunpack.c.l.bf16 %v3025_v2 }
 0x113   : > { %v1269_v29 = vsel %vm510_vm1, %v1266_v1, %v1268_v16  ;;  %v1338_v30 = vadd.f32 %v1267_v15, %v1062_v14  ;;  %v1718_v31 = vmul.f32 %v3670_v19, %v1682_v23  ;;  %v1831_v32 = vmul.f32 %v3673_v20, %v1682_v23  ;;  %v2928_v15 = vld [vmem:[%s3650_s25 + $0x54] sm:$0xff]  }
 0x114   : > { %v1339_v34 = vadd.f32 %v1269_v29, %v1063_v39  ;;  %v1543_v36 = vsel %vm787_vm2, %v1541_v24, %v1542_v7  ;;  %v1545_v38 = vsel %vm787_vm2, %v1542_v7, %v1544_v25  ;;  %v1719_v40 = vmul.f32 %v3670_v19, %v1683_v26 }
 0x115   : > { %v1614_v41 = vadd.f32 %v1543_v36, %v1338_v30  ;;  %v1832_v42 = vmul.f32 %v3673_v20, %v1683_v26  ;;  %v1833_v43 = vmul.f32 %v3673_v20, %v1785_v28  ;;  %v1953_v45 = vrot.slane %v1831_v32, 1 }
 0x116   : > { %v1615_v60 = vadd.f32 %v1545_v38, %v1339_v34  ;;  %v2061_v46 = vunpack.c.l.bf16 %v3041_v33  ;;  %v2108_v47 = vmul.f32 %v3721_v37, %v1683_v26  ;;  %v2109_v5 = vmul.f32 %v3721_v37, %v1785_v28  ;;  %v2954_v33 = vld [vmem:[%s3650_s25 + $0x5c] sm:$0x1] }
 0x117   : > { %v1750_v48 = vadd.f32 %v1718_v31, %v1614_v41  ;;  %v1954_v9 = vrot.slane %v1832_v42, 1  ;;  %v1956_v49 = vrot.slane %v1833_v43, 1  ;;  %v326_v22 = vmul.f32 %v4162_v6, %v3652_v10 }
 0x118   : > { %v1751_v51 = vadd.f32 %v1719_v40, %v1615_v60  ;;  %v2107_v21 = vmul.f32 %v3721_v37, %v2061_v46  ;;  %v2230_v52 = vrot.slane %v2108_v47, 2  ;;  %v2232_v53 = vrot.slane %v2109_v5, 2  ;;  %v2970_v60 = vld [vmem:[%s3650_s25 + $0x54] sm:$0xe] }
 0x119   : > { %v1955_v55 = vsel %vm510_vm1, %v1953_v45, %v1954_v9  ;;  %v1957_v56 = vsel %vm510_vm1, %v1954_v9, %v1956_v49  ;;  %v327_v58 = vmul.f32 %v4165_v50, %v3652_v10  ;;  %v400_v35 = vunpack.c.l.bf16 %v384_v63 }
 0x11a   : > { %v2026_v27 = vadd.f32 %v1955_v55, %v1750_v48  ;;  %v2027_v59 = vadd.f32 %v1957_v56, %v1751_v51  ;;  %v2229_v61 = vrot.slane %v2107_v21, 2  ;;  %v2233_v62 = vsel %vm787_vm2, %v2230_v52, %v2232_v53 }
 0x11b   : > { %v432_v0 = vmul.f32 %v4162_v6, %v3654_v11  ;;  %v433_v1 = vmul.f32 %v4165_v50, %v3654_v11  ;;  %v434_v2 = vmul.f32 %v3654_v11, %v400_v35  ;;  %v677_v39 = vunpack.c.l.bf16 %v661_v54  ;;  %v3018_v54 = vld [vmem:[%s3650_s25 + $0x68] sm:$0x1] }
 0x11c   : > { %v2231_v3 = vsel %vm787_vm2, %v2229_v61, %v2230_v52  ;;  %v2303_v4 = vadd.f32 %v2233_v62, %v2027_v59  ;;  %v710_v7 = vmul.f32 %v4165_v50, %v3657_v12  ;;  %v711_v14 = vmul.f32 %v3657_v12, %v400_v35 }
 0x11d   : > { %v2302_v16 = vadd.f32 %v2231_v3, %v2026_v27  ;;  %v541_v23 = vrot.slane %v432_v0, 1  ;;  %v542_v24 = vrot.slane %v433_v1, 1  ;;  %v544_v6 = vrot.slane %v434_v2, 1  ;;  %v3034_v3 = vld [vmem:[%s3650_s25 + $0x60] sm:$0xe] }
 0x11e   : > { %v2342_v25 = vadd.f32 %v4083_v8, %v2303_v4  ;;  %v709_v26 = vmul.f32 %v3657_v12, %v677_v39  ;;  %v819_v28 = vrot.slane %v710_v7, 2  ;;  %v821_v29 = vrot.slane %v711_v14, 2 }
 0x11f   : > { %v2341_v30 = vadd.f32 %v4083_v8, %v2302_v16  ;;  %v543_v31 = vsel %vm510_vm1, %v541_v23, %v542_v24  ;;  %v545_v50 = vsel %vm510_vm1, %v542_v24, %v544_v6  ;;  %v980_v32 = vunpack.c.l.bf16 %v2928_v15 }
 0x120   : > { %v2374_v34 = vmax.f32 %v2342_v25, 0.0  ;;  %v635_v36 = vadd.f32 %v543_v31, %v326_v22  ;;  %v636_v38 = vadd.f32 %v545_v50, %v327_v58  ;;  %v818_v40 = vrot.slane %v709_v26, 2  ;;  %v3326_v22 = vld [vmem:[%s3650_s25 + $0x60] sm:$0xff]  }
 0x121   : > { %v2373_v41 = vmax.f32 %v2341_v30, 0.0  ;;  %v822_v42 = vsel %vm787_vm2, %v819_v28, %v821_v29  ;;  %v981_v43 = vunpack.c.h.bf16 %v2928_v15  ;;  %v1016_v45 = vmul.f32 %v3659_v13, %v980_v32 }
 0x122   : > { %v820_v8 = vsel %vm787_vm2, %v818_v40, %v819_v28  ;;  %v913_v46 = vadd.f32 %v822_v42, %v636_v38  ;;  %v1090_v47 = vunpack.c.l.bf16 %v2954_v33  ;;  %v1122_v5 = vmul.f32 %v3664_v17, %v980_v32  ;;  %v392_v40 = vld [vmem:[%s3650_s25 + $0xb0] sm:$0x1] }
 0x123   : > { %v2392_v63 = vpack.c.bf16 %v2374_v34, %v2373_v41  ;;  %v912_v48 = vadd.f32 %v820_v8, %v635_v36  ;;  %v1017_v9 = vmul.f32 %v3659_v13, %v981_v43  ;;  %v1123_v49 = vmul.f32 %v3664_v17, %v981_v43 }
 0x124   : > { %v1124_v51 = vmul.f32 %v3664_v17, %v1090_v47  ;;  %v1230_v21 = vrot.slane %v1122_v5, 1  ;;  %v1366_v52 = vunpack.c.l.bf16 %v2970_v60  ;;  %v1399_v53 = vmul.f32 %v3667_v18, %v981_v43  ;;  %v669_v5 = vld [vmem:[%s3650_s25 + $0xa8] sm:$0xe] }
 0x125   : > { %3390 = vmatmul.mubr.msk.bf16.gmra.mrb[8].mxu1 %vm2403_vm3, %v2392_v63  ;;  %v1048_v55 = vadd.f32 %v1016_v45, %v912_v48  ;;  %v1049_v56 = vadd.f32 %v1017_v9, %v913_v46  ;;  %v1231_v58 = vrot.slane %v1123_v49, 1  ;;  %v1400_v35 = vmul.f32 %v3667_v18, %v1090_v47 }
 0x126   : > { %v1233_v27 = vrot.slane %v1124_v51, 1  ;;  %v1398_v59 = vmul.f32 %v3667_v18, %v1366_v52  ;;  %v1507_v61 = vrot.slane %v1399_v53, 2  ;;  %v4388_v62 = vunpack.c.l.bf16 %v3326_v22 }
 0x127   : > { %v1232_v0 = vsel %vm510_vm1, %v1230_v21, %v1231_v58  ;;  %v1509_v1 = vrot.slane %v1400_v35, 2  ;;  %v4391_v2 = vunpack.c.h.bf16 %v3326_v22  ;;  %v1778_v39 = vunpack.c.l.bf16 %v3018_v54 }
 0x128   : > { %v1234_v4 = vsel %vm510_vm1, %v1231_v58, %v1233_v27  ;;  %v1324_v7 = vadd.f32 %v1232_v0, %v1048_v55  ;;  %v1506_v14 = vrot.slane %v1398_v59, 2  ;;  %v1704_v15 = vmul.f32 %v4388_v62, %v3670_v19  ;;  %v2944_v58 = vld [vmem:[%s3650_s25 + $0xb4] sm:$0xff]  }
 0x129   : > { %v1325_v16 = vadd.f32 %v1234_v4, %v1049_v56  ;;  %v1510_v23 = vsel %vm787_vm2, %v1507_v61, %v1509_v1  ;;  %v1705_v24 = vmul.f32 %v4391_v2, %v3670_v19  ;;  %v1810_v6 = vmul.f32 %v4388_v62, %v3673_v20 }
 0x12a   : > { %v1508_v25 = vsel %vm787_vm2, %v1506_v14, %v1507_v61  ;;  %v1811_v26 = vmul.f32 %v4391_v2, %v3673_v20  ;;  %v1812_v28 = vmul.f32 %v3673_v20, %v1778_v39  ;;  %v2054_v29 = vunpack.c.l.bf16 %v3034_v3 }
 0x12b   : > { %v1600_v30 = vadd.f32 %v1508_v25, %v1324_v7  ;;  %v1601_v31 = vadd.f32 %v1510_v23, %v1325_v16  ;;  %v1918_v50 = vrot.slane %v1810_v6, 1  ;;  %v2087_v32 = vmul.f32 %v4391_v2, %v3721_v37 }
 0x12c   : > { %v1919_v33 = vrot.slane %v1811_v26, 1  ;;  %v1921_v34 = vrot.slane %v1812_v28, 1  ;;  %v2086_v36 = vmul.f32 %v3721_v37, %v2054_v29  ;;  %v2088_v38 = vmul.f32 %v3721_v37, %v1778_v39 }
 0x12d   : > { %v1736_v41 = vadd.f32 %v1704_v15, %v1600_v30  ;;  %v1737_v42 = vadd.f32 %v1705_v24, %v1601_v31  ;;  %v2195_v43 = vrot.slane %v2087_v32, 2  ;;  %v342_v45 = vmul.f32 %v4222_v57, %v3652_v10  ;;  %v2962_v15 = vld [vmem:[%s3650_s25 + $0xbc] sm:$0x1]  ;;  %v2978_v30 = vld [vmem:[%s3650_s25 + $0xb4] sm:$0xe] }
 0x12e   : > { %v1920_v60 = vsel %vm510_vm1, %v1918_v50, %v1919_v33  ;;  %v1922_v8 = vsel %vm510_vm1, %v1919_v33, %v1921_v34  ;;  %v2194_v46 = vrot.slane %v2086_v36, 2  ;;  %v2197_v47 = vrot.slane %v2088_v38, 2 }
 0x12f   : > { %v2012_v63 = vadd.f32 %v1920_v60, %v1736_v41  ;;  %v2013_v48 = vadd.f32 %v1922_v8, %v1737_v42  ;;  %v343_v9 = vmul.f32 %v4226_v44, %v3652_v10  ;;  %v408_v49 = vunpack.c.l.bf16 %v392_v40  ;;  %v3330_v41 = vld [vmem:[%s3650_s25 + $0xc0] sm:$0xff]  }
 0x130   : > { %v2196_v22 = vsel %vm787_vm2, %v2194_v46, %v2195_v43  ;;  %v2198_v51 = vsel %vm787_vm2, %v2195_v43, %v2197_v47  ;;  %v456_v21 = vmul.f32 %v4222_v57, %v3654_v11  ;;  %v457_v52 = vmul.f32 %v4226_v44, %v3654_v11  ;;  %v4432_v57 = vld [vmem:[%s4728_s2] ss:$0 sm:$0xff] }
 0x131   : > { %v2288_v53 = vadd.f32 %v2196_v22, %v2012_v63  ;;  %v2289_v54 = vadd.f32 %v2198_v51, %v2013_v48  ;;  %v458_v55 = vmul.f32 %v3654_v11, %v408_v49  ;;  %v685_v56 = vunpack.c.l.bf16 %v669_v5 }
 0x132   : > { %v581_v35 = vrot.slane %v456_v21, 1  ;;  %v582_v27 = vrot.slane %v457_v52, 1  ;;  %v734_v59 = vmul.f32 %v4226_v44, %v3657_v12  ;;  %v735_v61 = vmul.f32 %v3657_v12, %v408_v49  ;;  %v3026_v52 = vld [vmem:[%s3650_s25 + $0xc8] sm:$0x1] }
 0x133   : > { %v2327_v0 = vadd.f32 %v4432_v57, %v2288_v53  ;;  %v2328_v1 = vadd.f32 %v4432_v57, %v2289_v54  ;;  %v584_v39 = vrot.slane %v458_v55, 1  ;;  %v733_v3 = vmul.f32 %v3657_v12, %v685_v56 }
 0x134   : > { %v583_v4 = vsel %vm510_vm1, %v581_v35, %v582_v27  ;;  %v859_v7 = vrot.slane %v734_v59, 2  ;;  %v861_v14 = vrot.slane %v735_v61, 2  ;;  %v996_v44 = vunpack.c.l.bf16 %v2944_v58  ;;  %v3042_v35 = vld [vmem:[%s3650_s25 + $0xc0] sm:$0xe] }
 0x135   : > { %v2359_v16 = vmax.f32 %v2327_v0, 0.0  ;;  %v2360_v23 = vmax.f32 %v2328_v1, 0.0  ;;  %v585_v24 = vsel %vm510_vm1, %v582_v27, %v584_v39  ;;  %v651_v6 = vadd.f32 %v583_v4, %v342_v45 }
 0x136   : > { %v652_v25 = vadd.f32 %v585_v24, %v343_v9  ;;  %v858_v26 = vrot.slane %v733_v3, 2  ;;  %v862_v28 = vsel %vm787_vm2, %v859_v7, %v861_v14  ;;  %v997_v29 = vunpack.c.h.bf16 %v2944_v58 }
 0x137   : > { %v2385_v31 = vpack.c.bf16 %v2360_v23, %v2359_v16  ;;  %v1032_v50 = vmul.f32 %v3659_v13, %v996_v44  ;;  %v1098_v32 = vunpack.c.l.bf16 %v2962_v15  ;;  %v1146_v33 = vmul.f32 %v3664_v17, %v996_v44 }
 0x138   : > { %v860_v34 = vsel %vm787_vm2, %v858_v26, %v859_v7  ;;  %v929_v36 = vadd.f32 %v862_v28, %v652_v25  ;;  %v1033_v38 = vmul.f32 %v3659_v13, %v997_v29  ;;  %v1147_v40 = vmul.f32 %v3664_v17, %v997_v29  ;;  %v4448_v42 = vpop.f32.mrb[0].mxu0  ;;  %v260_v25 = vld [vmem:[%s3650_s25 + $0x54] sm:$0xff]  }
 0x139   : > { %3377 = vmatprep.mubr.msk.bf16.mxu0 %vm2403_vm3, %v2385_v31  ;;  %v928_v43 = vadd.f32 %v860_v34, %v651_v6  ;;  %v1148_v45 = vmul.f32 %v3664_v17, %v1098_v32  ;;  %v1270_v60 = vrot.slane %v1146_v33, 1  ;;  %v1374_v8 = vunpack.c.l.bf16 %v2978_v30  ;;  %v4452_v46 = vpop.f32.mrb[1].mxu0  ;;  %v385_v31 = vld [vmem:[%s3650_s25 + $0x5c] sm:$0x1] }
 0x13a   : > { %v1065_v47 = vadd.f32 %v1033_v38, %v929_v36  ;;  %v1271_v5 = vrot.slane %v1147_v40, 1  ;;  %v1423_v63 = vmul.f32 %v3667_v18, %v997_v29  ;;  %v1424_v48 = vmul.f32 %v3667_v18, %v1098_v32  ;;  %v4456_v9 = vpop.f32.mrb[2].mxu0 }
 0x13b   : > { %v1064_v49 = vadd.f32 %v1032_v50, %v928_v43  ;;  %v1273_v22 = vrot.slane %v1148_v45, 1  ;;  %v1422_v51 = vmul.f32 %v3667_v18, %v1374_v8  ;;  %v4459_v21 = vunpack.c.l.bf16 %v3330_v41  ;;  %v4462_v53 = vpop.f32.mrb[3].mxu0 }
 0x13c   : > { %v1272_v54 = vsel %vm510_vm1, %v1270_v60, %v1271_v5  ;;  %v1547_v55 = vrot.slane %v1423_v63, 2  ;;  %v1549_v56 = vrot.slane %v1424_v48, 2  ;;  %v4465_v58 = vunpack.c.h.bf16 %v3330_v41 }
 0x13d   : > { %v1274_v27 = vsel %vm510_vm1, %v1271_v5, %v1273_v22  ;;  %v1340_v59 = vadd.f32 %v1272_v54, %v1064_v49  ;;  %v1546_v61 = vrot.slane %v1422_v51, 2  ;;  %v1720_v0 = vmul.f32 %v4459_v21, %v3670_v19 }
 0x13e   : > { %v1341_v1 = vadd.f32 %v1274_v27, %v1065_v47  ;;  %v1550_v39 = vsel %vm787_vm2, %v1547_v55, %v1549_v56  ;;  %v1721_v3 = vmul.f32 %v4465_v58, %v3670_v19  ;;  %v1786_v4 = vunpack.c.l.bf16 %v3026_v52  ;;  %v662_v47 = vld [vmem:[%s3650_s25 + $0x54] sm:$0xe] }
 0x13f   : > { %v1548_v7 = vsel %vm787_vm2, %v1546_v61, %v1547_v55  ;;  %v1834_v14 = vmul.f32 %v4459_v21, %v3673_v20  ;;  %v1835_v44 = vmul.f32 %v4465_v58, %v3673_v20  ;;  %v2062_v15 = vunpack.c.l.bf16 %v3042_v35 }
 0x140   : > { %v1616_v16 = vadd.f32 %v1548_v7, %v1340_v59  ;;  %v1617_v23 = vadd.f32 %v1550_v39, %v1341_v1  ;;  %v1836_v24 = vmul.f32 %v3673_v20, %v1786_v4  ;;  %v2111_v6 = vmul.f32 %v4465_v58, %v3721_v37 }
 0x141   : > { %v1958_v26 = vrot.slane %v1834_v14, 1  ;;  %v1959_v28 = vrot.slane %v1835_v44, 1  ;;  %v2110_v29 = vmul.f32 %v3721_v37, %v2062_v15  ;;  %v2112_v30 = vmul.f32 %v3721_v37, %v1786_v4  ;;  %v2955_v14 = vld [vmem:[%s3650_s25 + $0x68] sm:$0x1] }
 0x142   : > { %v1752_v50 = vadd.f32 %v1720_v0, %v1616_v16  ;;  %v1753_v32 = vadd.f32 %v1721_v3, %v1617_v23  ;;  %v1961_v33 = vrot.slane %v1836_v24, 1  ;;  %v2235_v34 = vrot.slane %v2111_v6, 2 }
 0x143   : > { %v1960_v36 = vsel %vm510_vm1, %v1958_v26, %v1959_v28  ;;  %v2234_v38 = vrot.slane %v2110_v29, 2  ;;  %v2237_v40 = vrot.slane %v2112_v30, 2  ;;  %v292_v41 = vunpack.c.l.bf16 %v260_v25 }
 0x144   : > { %v1962_v43 = vsel %vm510_vm1, %v1959_v28, %v1961_v33  ;;  %v2028_v45 = vadd.f32 %v1960_v36, %v1752_v50  ;;  %v293_v60 = vunpack.c.h.bf16 %v260_v25  ;;  %v401_v8 = vunpack.c.l.bf16 %v385_v31  ;;  %v2971_v28 = vld [vmem:[%s3650_s25 + $0x60] sm:$0xe] }
 0x145   : > { %v2029_v5 = vadd.f32 %v1962_v43, %v1753_v32  ;;  %v2236_v63 = vsel %vm787_vm2, %v2234_v38, %v2235_v34  ;;  %v2238_v48 = vsel %vm787_vm2, %v2235_v34, %v2237_v40  ;;  %v328_v49 = vmul.f32 %v3652_v10, %v292_v41 }
 0x146   : > { %v2304_v22 = vadd.f32 %v2236_v63, %v2028_v45  ;;  %v329_v51 = vmul.f32 %v3652_v10, %v293_v60  ;;  %v435_v52 = vmul.f32 %v3654_v11, %v292_v41  ;;  %v436_v54 = vmul.f32 %v3654_v11, %v293_v60  ;;  %v2994_v45 = vld [vmem:[%s3650_s25 + $0x6c] sm:$0xff]  }
 0x147   : > { %v2305_v55 = vadd.f32 %v2238_v48, %v2029_v5  ;;  %v437_v56 = vmul.f32 %v3654_v11, %v401_v8  ;;  %v678_v35 = vunpack.c.l.bf16 %v662_v47  ;;  %v713_v27 = vmul.f32 %v3657_v12, %v293_v60 }
 0x148   : > { %v2343_v59 = vadd.f32 %v4432_v57, %v2304_v22  ;;  %v546_v61 = vrot.slane %v435_v52, 1  ;;  %v547_v0 = vrot.slane %v436_v54, 1  ;;  %v714_v1 = vmul.f32 %v3657_v12, %v401_v8  ;;  %v3019_v52 = vld [vmem:[%s3650_s25 + $0x74] sm:$0x1] }
 0x149   : > { %v2344_v39 = vadd.f32 %v4432_v57, %v2305_v55  ;;  %v549_v3 = vrot.slane %v437_v56, 1  ;;  %v712_v4 = vmul.f32 %v3657_v12, %v678_v35  ;;  %v824_v7 = vrot.slane %v713_v27, 2 }
 0x14a   : > { %v2375_v44 = vmax.f32 %v2343_v59, 0.0  ;;  %v548_v15 = vsel %vm510_vm1, %v546_v61, %v547_v0  ;;  %v826_v16 = vrot.slane %v714_v1, 2  ;;  %v1018_v23 = vmul.f32 %v4388_v62, %v3659_v13 }
 0x14b   : > { %v2376_v24 = vmax.f32 %v2344_v39, 0.0  ;;  %v550_v6 = vsel %vm510_vm1, %v547_v0, %v549_v3  ;;  %v637_v25 = vadd.f32 %v548_v15, %v328_v49  ;;  %v823_v26 = vrot.slane %v712_v4, 2  ;;  %v3035_v39 = vld [vmem:[%s3650_s25 + $0x6c] sm:$0xe] }
 0x14c   : > { %v638_v29 = vadd.f32 %v550_v6, %v329_v51  ;;  %v827_v30 = vsel %vm787_vm2, %v824_v7, %v826_v16  ;;  %v1019_v31 = vmul.f32 %v4391_v2, %v3659_v13  ;;  %v1091_v50 = vunpack.c.l.bf16 %v2955_v14 }
 0x14d   : > { %v2393_v32 = vpack.c.bf16 %v2376_v24, %v2375_v44  ;;  %v825_v33 = vsel %vm787_vm2, %v823_v26, %v824_v7  ;;  %v1125_v34 = vmul.f32 %v4388_v62, %v3664_v17  ;;  %v1126_v36 = vmul.f32 %v4391_v2, %v3664_v17 }
 0x14e   : > { %v914_v38 = vadd.f32 %v825_v33, %v637_v25  ;;  %v915_v40 = vadd.f32 %v827_v30, %v638_v29  ;;  %v1127_v41 = vmul.f32 %v3664_v17, %v1091_v50  ;;  %v1367_v43 = vunpack.c.l.bf16 %v2971_v28  ;;  %v4517_v60 = vpop.f32.mrb[0].mxu1  ;;  %v276_v28 = vld [vmem:[%s3650_s25 + $0xb4] sm:$0xff]  }
 0x14f   : > { %3393 = vmatprep.mubr.msk.bf16.mxu1 %vm2403_vm3, %v2393_v32  ;;  %v1235_v8 = vrot.slane %v1125_v34, 1  ;;  %v1236_v47 = vrot.slane %v1126_v36, 1  ;;  %v1402_v5 = vmul.f32 %v4391_v2, %v3667_v18  ;;  %v1403_v62 = vmul.f32 %v3667_v18, %v1091_v50  ;;  %v4523_v63 = vpop.f32.mrb[1].mxu1 }
 0x150   : > { %v1050_v48 = vadd.f32 %v1018_v23, %v914_v38  ;;  %v1051_v49 = vadd.f32 %v1019_v31, %v915_v40  ;;  %v1238_v22 = vrot.slane %v1127_v41, 1  ;;  %v1401_v51 = vmul.f32 %v3667_v18, %v1367_v43  ;;  %v4527_v54 = vpop.f32.mrb[2].mxu1  ;;  %v393_v38 = vld [vmem:[%s3650_s25 + $0xbc] sm:$0x1] }
 0x151   : > { %v1237_v55 = vsel %vm510_vm1, %v1235_v8, %v1236_v47  ;;  %v1512_v56 = vrot.slane %v1402_v5, 2  ;;  %v1514_v35 = vrot.slane %v1403_v62, 2  ;;  %v1670_v27 = vunpack.c.l.bf16 %v2994_v45  ;;  %v4530_v59 = vpop.f32.mrb[3].mxu1 }
 0x152   : > { %v1239_v2 = vsel %vm510_vm1, %v1236_v47, %v1238_v22  ;;  %v1326_v61 = vadd.f32 %v1237_v55, %v1050_v48  ;;  %v1511_v0 = vrot.slane %v1401_v51, 2  ;;  %v1671_v1 = vunpack.c.h.bf16 %v2994_v45  ;;  %v670_v48 = vld [vmem:[%s3650_s25 + $0xb4] sm:$0xe] }
 0x153   : > { %v1327_v3 = vadd.f32 %v1239_v2, %v1051_v49  ;;  %v1515_v4 = vsel %vm787_vm2, %v1512_v56, %v1514_v35  ;;  %v1706_v7 = vmul.f32 %v3670_v19, %v1670_v27  ;;  %v1779_v14 = vunpack.c.l.bf16 %v3019_v52 }
 0x154   : > { %v1513_v44 = vsel %vm787_vm2, %v1511_v0, %v1512_v56  ;;  %v1707_v15 = vmul.f32 %v3670_v19, %v1671_v1  ;;  %v1813_v16 = vmul.f32 %v3673_v20, %v1670_v27  ;;  %v1814_v23 = vmul.f32 %v3673_v20, %v1671_v1 }
 0x155   : > { %v1602_v24 = vadd.f32 %v1513_v44, %v1326_v61  ;;  %v1603_v6 = vadd.f32 %v1515_v4, %v1327_v3  ;;  %v1815_v25 = vmul.f32 %v3673_v20, %v1779_v14  ;;  %v2055_v26 = vunpack.c.l.bf16 %v3035_v39 }
 0x156   : > { %v1923_v29 = vrot.slane %v1813_v16, 1  ;;  %v1924_v30 = vrot.slane %v1814_v23, 1  ;;  %v2090_v31 = vmul.f32 %v3721_v37, %v1671_v1  ;;  %v2091_v50 = vmul.f32 %v3721_v37, %v1779_v14 }
 0x157   : > { %v1738_v32 = vadd.f32 %v1706_v7, %v1602_v24  ;;  %v1739_v33 = vadd.f32 %v1707_v15, %v1603_v6  ;;  %v1926_v34 = vrot.slane %v1815_v25, 1  ;;  %v2089_v36 = vmul.f32 %v3721_v37, %v2055_v26  ;;  %v2963_v6 = vld [vmem:[%s3650_s25 + $0xc8] sm:$0x1] }
 0x158   : > { %v1925_v40 = vsel %vm510_vm1, %v1923_v29, %v1924_v30  ;;  %v2200_v41 = vrot.slane %v2090_v31, 2  ;;  %v2202_v43 = vrot.slane %v2091_v50, 2  ;;  %v308_v45 = vunpack.c.l.bf16 %v276_v28 }
 0x159   : > { %v1927_v8 = vsel %vm510_vm1, %v1924_v30, %v1926_v34  ;;  %v2014_v47 = vadd.f32 %v1925_v40, %v1738_v32  ;;  %v2199_v5 = vrot.slane %v2089_v36, 2  ;;  %v309_v62 = vunpack.c.h.bf16 %v276_v28  ;;  %v2979_v30 = vld [vmem:[%s3650_s25 + $0xc0] sm:$0xe] }
 0x15a   : > { %v2015_v49 = vadd.f32 %v1927_v8, %v1739_v33  ;;  %v2203_v22 = vsel %vm787_vm2, %v2200_v41, %v2202_v43  ;;  %v344_v51 = vmul.f32 %v3652_v10, %v308_v45  ;;  %v409_v52 = vunpack.c.l.bf16 %v393_v38  ;;  %v3010_v8 = vld [vmem:[%s3650_s25 + $0xcc] sm:$0xff]  }
 0x15b   : > { %v2201_v55 = vsel %vm787_vm2, %v2199_v5, %v2200_v41  ;;  %v345_v56 = vmul.f32 %v3652_v10, %v309_v62  ;;  %v459_v35 = vmul.f32 %v3654_v11, %v308_v45  ;;  %v460_v27 = vmul.f32 %v3654_v11, %v309_v62 }
 0x15c   : > { %v2290_v2 = vadd.f32 %v2201_v55, %v2014_v47  ;;  %v2291_v61 = vadd.f32 %v2203_v22, %v2015_v49  ;;  %v461_v0 = vmul.f32 %v3654_v11, %v409_v52  ;;  %v686_v1 = vunpack.c.l.bf16 %v670_v48  ;;  %v3027_v48 = vld [vmem:[%s3650_s25 + $0xd4] sm:$0x1] }
 0x15d   : > { %v586_v39 = vrot.slane %v459_v35, 1  ;;  %v587_v3 = vrot.slane %v460_v27, 1  ;;  %v737_v4 = vmul.f32 %v3657_v12, %v309_v62  ;;  %v738_v7 = vmul.f32 %v3657_v12, %v409_v52 }
 0x15e   : > { %v2329_v14 = vadd.f32 %v4432_v57, %v2290_v2  ;;  %v2330_v10 = vadd.f32 %v4432_v57, %v2291_v61  ;;  %v589_v44 = vrot.slane %v461_v0, 1  ;;  %v736_v15 = vmul.f32 %v3657_v12, %v686_v1 }
 0x15f   : > { %v588_v16 = vsel %vm510_vm1, %v586_v39, %v587_v3  ;;  %v864_v23 = vrot.slane %v737_v4, 2  ;;  %v866_v24 = vrot.slane %v738_v7, 2  ;;  %v1034_v11 = vmul.f32 %v4459_v21, %v3659_v13 }
 0x160   : > { %v2361_v25 = vmax.f32 %v2329_v14, 0.0  ;;  %v2362_v26 = vmax.f32 %v2330_v10, 0.0  ;;  %v590_v28 = vsel %vm510_vm1, %v587_v3, %v589_v44  ;;  %v653_v29 = vadd.f32 %v588_v16, %v344_v51  ;;  %v3043_v3 = vld [vmem:[%s3650_s25 + $0xcc] sm:$0xe]  ;;  %v4594_v10 = vld [vmem:[%s4730_s4] ss:$0 sm:$0xff] }
 0x161   : > { %v654_v31 = vadd.f32 %v590_v28, %v345_v56  ;;  %v863_v50 = vrot.slane %v736_v15, 2  ;;  %v867_v32 = vsel %vm787_vm2, %v864_v23, %v866_v24  ;;  %v1035_v12 = vmul.f32 %v4465_v58, %v3659_v13 }
 0x162   : > { %v2386_v33 = vpack.c.bf16 %v2362_v26, %v2361_v25  ;;  %v1099_v34 = vunpack.c.l.bf16 %v2963_v6  ;;  %v1149_v36 = vmul.f32 %v4459_v21, %v3664_v17  ;;  %v1150_v38 = vmul.f32 %v4465_v58, %v3664_v17 }
 0x163   : > { %v865_v40 = vsel %vm787_vm2, %v863_v50, %v864_v23  ;;  %v931_v41 = vadd.f32 %v867_v32, %v654_v31  ;;  %v1375_v43 = vunpack.c.l.bf16 %v2979_v30  ;;  %v1426_v45 = vmul.f32 %v4465_v58, %v3667_v18 }
 0x164   : > { %3378 = vmatmul.mubr.msk.bf16.gmra.mrb[12].mxu0 %vm2403_vm3, %v2386_v33  ;;  %v930_v47 = vadd.f32 %v865_v40, %v653_v29  ;;  %v1151_v13 = vmul.f32 %v3664_v17, %v1099_v34  ;;  %v1275_v5 = vrot.slane %v1149_v36, 1  ;;  %v1276_v62 = vrot.slane %v1150_v38, 1 }
 0x165   : > { %v1067_v21 = vadd.f32 %v1035_v12, %v931_v41  ;;  %v1425_v49 = vmul.f32 %v3667_v18, %v1375_v43  ;;  %v1427_v22 = vmul.f32 %v3667_v18, %v1099_v34  ;;  %v1552_v51 = vrot.slane %v1426_v45, 2 }
 0x166   : > { %v1066_v52 = vadd.f32 %v1034_v11, %v930_v47  ;;  %v1277_v55 = vsel %vm510_vm1, %v1275_v5, %v1276_v62  ;;  %v1278_v58 = vrot.slane %v1151_v13, 1  ;;  %v1686_v56 = vunpack.c.l.bf16 %v3010_v8 }
 0x167   : > { %v1551_v35 = vrot.slane %v1425_v49, 2  ;;  %v1554_v27 = vrot.slane %v1427_v22, 2  ;;  %v1687_v2 = vunpack.c.h.bf16 %v3010_v8  ;;  %v1787_v61 = vunpack.c.l.bf16 %v3027_v48 }
 0x168   : > { %v1279_v17 = vsel %vm510_vm1, %v1276_v62, %v1278_v58  ;;  %v1342_v0 = vadd.f32 %v1277_v55, %v1066_v52  ;;  %v1722_v1 = vmul.f32 %v3670_v19, %v1686_v56  ;;  %v1837_v39 = vmul.f32 %v3673_v20, %v1686_v56 }
 0x169   : > { %v1343_v4 = vadd.f32 %v1279_v17, %v1067_v21  ;;  %v1553_v18 = vsel %vm787_vm2, %v1551_v35, %v1552_v51  ;;  %v1555_v7 = vsel %vm787_vm2, %v1552_v51, %v1554_v27  ;;  %v1723_v14 = vmul.f32 %v3670_v19, %v1687_v2 }
 0x16a   : > { %v1618_v44 = vadd.f32 %v1553_v18, %v1342_v0  ;;  %v1838_v15 = vmul.f32 %v3673_v20, %v1687_v2  ;;  %v1839_v16 = vmul.f32 %v3673_v20, %v1787_v61  ;;  %v1963_v23 = vrot.slane %v1837_v39, 1 }
 0x16b   : > { %v1619_v24 = vadd.f32 %v1555_v7, %v1343_v4  ;;  %v2063_v11 = vunpack.c.l.bf16 %v3043_v3  ;;  %v2114_v6 = vmul.f32 %v3721_v37, %v1687_v2  ;;  %v2115_v25 = vmul.f32 %v3721_v37, %v1787_v61 }
 0x16c   : > { %v1754_v26 = vadd.f32 %v1722_v1, %v1618_v44  ;;  %v1964_v19 = vrot.slane %v1838_v15, 1  ;;  %v1966_v28 = vrot.slane %v1839_v16, 1  ;;  %v2499_v29 = vadd.f32 %v4448_v42, %v4594_v10 }
 0x16d   : > { %v1755_v30 = vadd.f32 %v1723_v14, %v1619_v24  ;;  %v2113_v31 = vmul.f32 %v3721_v37, %v2063_v11  ;;  %v2240_v50 = vrot.slane %v2114_v6, 2  ;;  %v2242_v32 = vrot.slane %v2115_v25, 2 }
 0x16e   : > { %v1965_v20 = vsel %vm510_vm1, %v1963_v23, %v1964_v19  ;;  %v1967_v12 = vsel %vm510_vm1, %v1964_v19, %v1966_v28  ;;  %v2563_v33 = vadd.f32 %v4517_v60, %v4594_v10  ;;  %v2619_v42 = vmax.f32 %v2499_v29, 0.0 }
 0x16f   : > { %v2030_v34 = vadd.f32 %v1965_v20, %v1754_v26  ;;  %v2031_v36 = vadd.f32 %v1967_v12, %v1755_v30  ;;  %v2239_v38 = vrot.slane %v2113_v31, 2  ;;  %v2243_v40 = vsel %vm787_vm2, %v2240_v50, %v2242_v32 }
 0x170   : > { %v2491_v41 = vadd.f32 %v4594_v10, %v4452_v46  ;;  %v2555_v37 = vadd.f32 %v4594_v10, %v4523_v63  ;;  %v2502_v43 = vadd.f32 %v4456_v9, %v4594_v10  ;;  %v2566_v8 = vadd.f32 %v4527_v54, %v4594_v10 }
 0x171   : > { %v2241_v45 = vsel %vm787_vm2, %v2239_v38, %v2240_v50  ;;  %v2307_v60 = vadd.f32 %v2243_v40, %v2031_v36  ;;  %v2494_v47 = vadd.f32 %v4594_v10, %v4462_v53  ;;  %v2635_v5 = vmax.f32 %v2563_v33, 0.0 }
 0x172   : > { %v2306_v13 = vadd.f32 %v2241_v45, %v2030_v34  ;;  %v2617_v46 = vmax.f32 %v2491_v41, 0.0  ;;  %v2620_v62 = vmax.f32 %v2502_v43, 0.0  ;;  %v2636_v48 = vmax.f32 %v2566_v8, 0.0 }
 0x173   : > { %v2346_v63 = vadd.f32 %v4432_v57, %v2307_v60  ;;  %v2618_v21 = vmax.f32 %v2494_v47, 0.0  ;;  %v2558_v9 = vadd.f32 %v4594_v10, %v4530_v59  ;;  %v2633_v22 = vmax.f32 %v2555_v37, 0.0 }
 0x174   : > { %v2345_v49 = vadd.f32 %v4432_v57, %v2306_v13  ;;  %v3236_v51 = vpack.c.bf16 %v2620_v62, %v2619_v42  ;;  %v3276_v54 = vpack.c.bf16 %v2636_v48, %v2635_v5 }
 0x175   : > { %v2378_v52 = vmax.f32 %v2346_v63, 0.0  ;;  %v3231_v55 = vpack.c.bf16 %v2618_v21, %v2617_v46  ;;  %v2634_v58 = vmax.f32 %v2558_v9, 0.0 }
 0x176   : > { %v2377_v53 = vmax.f32 %v2345_v49, 0.0  ;;  %3331 = vst [vmem:[%s4626_s15 + $0x8] sm:$0xff] %v3236_v51   ;;  %3339 = vst [vmem:[%s4626_s15 + $0x48] sm:$0xff] %v3276_v54  }
 0x177   : > { %3232 = vst [vmem:[%s4626_s15] sm:$0xff] %v3231_v55   ;;  %v3271_v56 = vpack.c.bf16 %v2634_v58, %v2633_v22 }
 0x178   : > { %v2394_v59 = vpack.c.bf16 %v2378_v52, %v2377_v53 }
 0x179   : > { %3338 = vst [vmem:[%s4626_s15 + $0x40] sm:$0xff] %v3271_v56  }
 0x17a   : > { %3394 = vmatmul.mubr.msk.bf16.gmra.mrb[12].mxu1 %vm2403_vm3, %v2394_v59 }
 0x18d   : > { %v3371_v57 = vpop.f32.mrb[4].mxu0 }
 0x18e   : > { %v2515_v35 = vadd.f32 %v3371_v57, %v4594_v10  ;;  %v2506_v27 = vpop.f32.mrb[5].mxu0 }
 0x18f   : > { %v2507_v2 = vadd.f32 %v4594_v10, %v2506_v27  ;;  %v3372_v61 = vpop.f32.mrb[6].mxu0 }
 0x190   : > { %v2518_v17 = vadd.f32 %v3372_v61, %v4594_v10  ;;  %v2509_v0 = vpop.f32.mrb[7].mxu0  ;;  %v2623_v39 = vmax.f32 %v2515_v35, 0.0 }
 0x191   : > { %v2510_v1 = vadd.f32 %v4594_v10, %v2509_v0  ;;  %v2621_v4 = vmax.f32 %v2507_v2, 0.0 }
 0x192   : > { %v2624_v3 = vmax.f32 %v2518_v17, 0.0 }
 0x193   : > { %v2622_v18 = vmax.f32 %v2510_v1, 0.0 }
 0x194   : > { %v3246_v7 = vpack.c.bf16 %v2624_v3, %v2623_v39 }
 0x195   : > { %v3241_v14 = vpack.c.bf16 %v2622_v18, %v2621_v4 }
 0x196   : > { %3333 = vst [vmem:[%s4626_s15 + $0x18] sm:$0xff] %v3246_v7  }
 0x197   : > { %3332 = vst [vmem:[%s4626_s15 + $0x10] sm:$0xff] %v3241_v14  }
 0x1a3   : > { %v3387_v44 = vpop.f32.mrb[4].mxu1 }
 0x1a4   : > { %v2579_v15 = vadd.f32 %v3387_v44, %v4594_v10  ;;  %v2570_v16 = vpop.f32.mrb[5].mxu1 }
 0x1a5   : > { %v2571_v23 = vadd.f32 %v4594_v10, %v2570_v16  ;;  %v3388_v24 = vpop.f32.mrb[6].mxu1 }
 0x1a6   : > { %v2582_v11 = vadd.f32 %v3388_v24, %v4594_v10  ;;  %v2573_v6 = vpop.f32.mrb[7].mxu1  ;;  %v2639_v26 = vmax.f32 %v2579_v15, 0.0 }
 0x1a7   : > { %v2574_v25 = vadd.f32 %v4594_v10, %v2573_v6  ;;  %v2637_v28 = vmax.f32 %v2571_v23, 0.0 }
 0x1a8   : > { %v2640_v19 = vmax.f32 %v2582_v11, 0.0 }
 0x1a9   : > { %v2638_v29 = vmax.f32 %v2574_v25, 0.0 }
 0x1aa   : > { %v3286_v30 = vpack.c.bf16 %v2640_v19, %v2639_v26 }
 0x1ab   : > { %v3281_v31 = vpack.c.bf16 %v2638_v29, %v2637_v28 }
 0x1ac   : > { %3341 = vst [vmem:[%s4626_s15 + $0x58] sm:$0xff] %v3286_v30  }
 0x1ad   : > { %3340 = vst [vmem:[%s4626_s15 + $0x50] sm:$0xff] %v3281_v31  }
 0x1e2   : > { %v3375_v50 = vpop.f32.mrb[8].mxu0 }
 0x1e3   : > { %v2531_v32 = vadd.f32 %v3375_v50, %v4594_v10  ;;  %v2522_v20 = vpop.f32.mrb[9].mxu0 }
 0x1e4   : > { %v2523_v12 = vadd.f32 %v4594_v10, %v2522_v20  ;;  %v3376_v33 = vpop.f32.mrb[10].mxu0 }
 0x1e5   : > { %v2534_v34 = vadd.f32 %v3376_v33, %v4594_v10  ;;  %v2525_v36 = vpop.f32.mrb[11].mxu0  ;;  %v2627_v40 = vmax.f32 %v2531_v32, 0.0 }
 0x1e6   : > { %v2526_v38 = vadd.f32 %v4594_v10, %v2525_v36  ;;  %v2625_v41 = vmax.f32 %v2523_v12, 0.0 }
 0x1e7   : > { %v2628_v42 = vmax.f32 %v2534_v34, 0.0 }
 0x1e8   : > { %v2626_v37 = vmax.f32 %v2526_v38, 0.0 }
 0x1e9   : > { %v3256_v43 = vpack.c.bf16 %v2628_v42, %v2627_v40 }
 0x1ea   : > { %v3251_v45 = vpack.c.bf16 %v2626_v37, %v2625_v41 }
 0x1eb   : > { %3335 = vst [vmem:[%s4626_s15 + $0x28] sm:$0xff] %v3256_v43  }
 0x1ec   : > { %3334 = vst [vmem:[%s4626_s15 + $0x20] sm:$0xff] %v3251_v45  }
 0x1f8   : > { %v3391_v60 = vpop.f32.mrb[8].mxu1 }
 0x1f9   : > { %v2595_v8 = vadd.f32 %v3391_v60, %v4594_v10  ;;  %v2586_v47 = vpop.f32.mrb[9].mxu1 }
 0x1fa   : > { %v2587_v13 = vadd.f32 %v4594_v10, %v2586_v47  ;;  %v3392_v5 = vpop.f32.mrb[10].mxu1 }
 0x1fb   : > { %v2598_v46 = vadd.f32 %v3392_v5, %v4594_v10  ;;  %v2589_v62 = vpop.f32.mrb[11].mxu1  ;;  %v2643_v48 = vmax.f32 %v2595_v8, 0.0 }
 0x1fc   : > { %v2590_v63 = vadd.f32 %v4594_v10, %v2589_v62  ;;  %v2641_v9 = vmax.f32 %v2587_v13, 0.0 }
 0x1fd   : > { %v2644_v21 = vmax.f32 %v2598_v46, 0.0 }
 0x1fe   : > { %v2642_v49 = vmax.f32 %v2590_v63, 0.0 }
 0x1ff   : > { %v3296_v22 = vpack.c.bf16 %v2644_v21, %v2643_v48 }
 0x200   : > { %v3291_v51 = vpack.c.bf16 %v2642_v49, %v2641_v9 }
 0x201   : > { %3343 = vst [vmem:[%s4626_s15 + $0x68] sm:$0xff] %v3296_v22  }
 0x202   : > { %3342 = vst [vmem:[%s4626_s15 + $0x60] sm:$0xff] %v3291_v51  }
 0x237   : > { %v3379_v52 = vpop.f32.mrb[12].mxu0 }
 0x238   : > { %v2547_v54 = vadd.f32 %v3379_v52, %v4594_v10  ;;  %v2538_v55 = vpop.f32.mrb[13].mxu0 }
 0x239   : > { %v2539_v58 = vadd.f32 %v4594_v10, %v2538_v55  ;;  %v3380_v53 = vpop.f32.mrb[14].mxu0 }
 0x23a   : > { %v2550_v56 = vadd.f32 %v3380_v53, %v4594_v10  ;;  %v2541_v59 = vpop.f32.mrb[15].mxu0  ;;  %v2631_v35 = vmax.f32 %v2547_v54, 0.0 }
 0x23b   : > { %v2542_v57 = vadd.f32 %v4594_v10, %v2541_v59  ;;  %v2629_v2 = vmax.f32 %v2539_v58, 0.0 }
 0x23c   : > { %v2632_v27 = vmax.f32 %v2550_v56, 0.0 }
 0x23d   : > { %v2630_v61 = vmax.f32 %v2542_v57, 0.0 }
 0x23e   : > { %v3266_v17 = vpack.c.bf16 %v2632_v27, %v2631_v35 }
 0x23f   : > { %v3261_v0 = vpack.c.bf16 %v2630_v61, %v2629_v2 }
 0x240   : > { %3337 = vst [vmem:[%s4626_s15 + $0x38] sm:$0xff] %v3266_v17  }
 0x241   : > { %3336 = vst [vmem:[%s4626_s15 + $0x30] sm:$0xff] %v3261_v0  }
 0x24d   : > { %v3395_v1 = vpop.f32.mrb[12].mxu1 }
 0x24e   : > { %v2611_v39 = vadd.f32 %v3395_v1, %v4594_v10  ;;  %v2602_v3 = vpop.f32.mrb[13].mxu1 }
 0x24f   : > { %v2603_v4 = vadd.f32 %v4594_v10, %v2602_v3  ;;  %v3396_v18 = vpop.f32.mrb[14].mxu1 }
 0x250   : > { %v2614_v7 = vadd.f32 %v3396_v18, %v4594_v10  ;;  %v2605_v14 = vpop.f32.mrb[15].mxu1  ;;  %v2647_v15 = vmax.f32 %v2611_v39, 0.0 }
 0x251   : > { %v2606_v44 = vadd.f32 %v4594_v10, %v2605_v14  ;;  %v2645_v23 = vmax.f32 %v2603_v4, 0.0 }
 0x252   : > { %v2648_v16 = vmax.f32 %v2614_v7, 0.0 }
 0x253   : > { %v2646_v24 = vmax.f32 %v2606_v44, 0.0 }
 0x254   : > { %v3306_v11 = vpack.c.bf16 %v2648_v16, %v2647_v15 }
 0x255   : > { %v3301_v6 = vpack.c.bf16 %v2646_v24, %v2645_v23 }
 0x256   : > { %3345 = vst [vmem:[%s4626_s15 + $0x78] sm:$0xff] %v3306_v11  }
 0x257   : > { %3344 = vst [vmem:[%s4626_s15 + $0x70] sm:$0xff] %v3301_v6  }
 0x258   : > { %3474 = shalt.err (!%p3471_p5)
}
 0x259   : > { %s3475_s10 = scalar_lea.hbm %s4672_s27, 2048  ;;  %s3479_s13 = scalar_lea.hbm %s4731_s5, 4096 }
 0x25a   : > { %p3476_p6 = scmp.ne.s32.totalorder %s4672_s27, %s3475_s10  ;;  %p3480_p10 = scmp.lt.u32.totalorder %s4672_s27, %s4731_s5 }
 0x25b   : > { %p3481_p11 = scmp.lt.u32.totalorder %s3479_s13, %s3475_s10  ;;  %p3483_p13 = scmp.lt.u32.totalorder %s3475_s10, %s4672_s27 }
 0x25c   : > { %p3477_p7 = pnand %p3476_p6, %p3614_p4 }
 0x25d   : > { %p3482_p12 = por %p3481_p11, %p3480_p10 }
 0x25e   : > { %p3478_p9 = pneg %p3477_p7 }
 0x25f   : > { %p3484_p0 = por %p3483_p13, %p3482_p12 }
 0x261   : > { %p3485_p1 = pnand %p3484_p0, %p3478_p9 }
 0x263   : > { %3488 = shalt.err (!%p3485_p1)
}
 0x264   : > { %s3542_s16 = smov 64   ;;  %s3543_s24 = smov 4  }
 0x265   : > { %3402 = dma.vmem_to_hbm [thread:$0]  (%p3614_p4), %s4674_s17, 2048, %s4672_s27, %s4680_s21, %s3542_s16, %s3542_s16, %s3543_s24  }
 0x266 PF: > { %p3408_p2 = scmp.ge.s32.totalorder %s3539_s23, 2  ;;  %s2841_s25 = sand.u32 1, %s3519_s18  }
 0x267   : > { %s2842_s29 = scalar_lea.sflag [#allocation3], %s2841_s25 }
 0x268   : > { %p3405_p3 = pnand %p3408_p2, %p3621_p8 }
 0x26a   : > { %3514 = dma.done.wait (!%p3405_p3), %s2842_s29, 2048  }
 0x26b   : > { %3516 = vsyncadd (!%p3405_p3), %s2842_s29, 4294965248  ;;  %s18_s23 = sadd.s32 1, %s3539_s23   ;;  %s4734_s18 = smov %s3523_s19 }
 0x26c   : > { %p15_p5 = scmp.ge.s32.totalorder %s18_s23, 4   ;;  %s4735_s19 = smov %s3527_s20 }
 0x26d   : > { %s4736_s20 = smov %s3627_s6  ;;  %s4737_s21 = smov %s3535_s22 }
 0x26e   : > { %s4738_s22 = smov %s4740_s26  ;;  %17 = sbr.rel (!%p15_p5) target bundleno = 4 (0x4), region = 78 }
 0x275   :  { %2847 = vsyncpa [#allocation3], 1 }
 0x276   :  { %2849 = vsyncpa [#allocation3 + $0x1], 1 }

</bundles_post_ra>
